<compile_context>
chip_gen: v6e
topology: v6e:2x2x1
jax: 0.10.0
libtpu: 0.0.40
codegen_flags: <defaults>
</compile_context>

<pallas_src>
import functools

import jax
import jax.numpy as jnp
from jax.experimental import pallas as pl
from jax.experimental.pallas import tpu as pltpu

LANE = 128


def _round_up(v, m):
    return (v + m - 1) // m * m


# -----------------------------------------------------------------------------
# One EdgeGatedGraphConv pass, grid-tiled over the edge rows.
#   nodes:  nf [n, dp]          (resident, untiled)
#   edges:  ef [e_pad, dp]      (tiled, edge_tile rows per grid step)
#   inc:    [e_pad, 2n] = [ one_hot(dst) | one_hot(src) ]   (tiled with ef)
# -----------------------------------------------------------------------------
def _egc_kernel(nf_ref, ef_ref, inc_ref,
                w_node_ref, b_node_ref, w_eg_ref, b_eg_ref, ln_ref,
                x_out_ref, y_out_ref,
                node_lin_sc, rhs_sc, acc_sc, srhs_sc,
                *, d_real):
    n, dp = nf_ref.shape
    i = pl.program_id(0)
    inv_d = 1.0 / d_real
    ln = ln_ref[...]

    def ln_silu(v, g, b):
        # LayerNorm over the real feature dim (padded lanes of v are exactly 0,
        # so sums over the padded width stay exact), followed by SiLU.
        mu = jnp.sum(v, axis=-1, keepdims=True) * inv_d
        msq = jnp.sum(v * v, axis=-1, keepdims=True) * inv_d
        var = jnp.maximum(msq - mu * mu, 0.0)
        vn = (v - mu) * jax.lax.rsqrt(var + 1e-5) * g + b
        return vn * jax.nn.sigmoid(vn)

    @pl.when(i == 0)
    def _init():
        # Fused node-side linears: one lane-dense [n, 4*dp] MXU matmul.
        # Column layout: [ e_src | Bh | e_dst | Uh ]  (each block dp lanes).
        node_lin = jnp.dot(nf_ref[...], w_node_ref[...],
                           preferred_element_type=jnp.float32) + b_node_ref[...]
        node_lin_sc[...] = node_lin
        # Gather RHS [2n, 2dp]: rows 0:n pair with the one_hot(dst) half of the
        # stacked incidence, rows n:2n with the one_hot(src) half:
        #     [[ e_dst | 0 ], [ e_src | Bh ]]
        rhs_sc[:n, :dp] = node_lin[:, 2 * dp:3 * dp]
        rhs_sc[:n, dp:] = jnp.zeros((n, dp), jnp.float32)
        rhs_sc[n:, :] = node_lin[:, :2 * dp]
        acc_sc[...] = jnp.zeros_like(acc_sc)

    inc = inc_ref[...]                                  # [te, 2n]

    # Fused gather (u_add_v for the gate + u->e copy of Bh): one matmul.
    gath = jnp.dot(inc, rhs_sc[...], preferred_element_type=jnp.float32)
    m = (gath[:, :dp]
         + jnp.dot(ef_ref[...], w_eg_ref[...], preferred_element_type=jnp.float32)
         + b_eg_ref[...])
    sigma = jax.nn.sigmoid(m)

    # Scatter-sum to dst nodes, accumulated across edge tiles.  The scatter RHS
    # is written into a pre-allocated VMEM scratch (no concatenate copy), and
    # the scatter reuses the dst half of the incidence tile as a transposed-LHS
    # contraction (no second, transposed incidence copy needed).
    srhs_sc[:, :dp] = gath[:, dp:] * sigma              # Bh[src] * sigma
    srhs_sc[:, dp:] = sigma
    acc_sc[...] += jax.lax.dot_general(
        inc[:, :n], srhs_sc[...],
        dimension_numbers=(((0,), (0,)), ((), ())),
        preferred_element_type=jnp.float32)

    # Edge branch: y = ef + SiLU(LN(m)), written per tile (lane-dense rows).
    y_out_ref[...] = ef_ref[...] + ln_silu(m, ln[2:3, :], ln[3:4, :])

    @pl.when(i == pl.num_programs(0) - 1)
    def _finish():
        h = acc_sc[:, :dp] / (acc_sc[:, dp:] + 1e-6)    # exact division (matches torch)
        xu = node_lin_sc[:, 3 * dp:] + h                # Uh + h
        x_out_ref[...] = nf_ref[...] + ln_silu(xu, ln[0:1, :], ln[1:2, :])


def _egc_pass(nf, ef, inc, params, *, d_real, edge_tile):
    n, dp = nf.shape
    e_pad = ef.shape[0]
    assert e_pad % edge_tile == 0
    w_node, b_node, w_eg, b_eg, ln = params

    grid_spec = pltpu.PrefetchScalarGridSpec(
        num_scalar_prefetch=0,
        grid=(e_pad // edge_tile,),
        in_specs=[
            pl.BlockSpec((n, dp), lambda i: (0, 0)),             # node feats (resident)
            pl.BlockSpec((edge_tile, dp), lambda i: (i, 0)),     # edge feats tile
            pl.BlockSpec((edge_tile, 2 * n), lambda i: (i, 0)),  # [dst|src] incidence tile
            pl.BlockSpec((dp, 4 * dp), lambda i: (0, 0)),        # fused node weights
            pl.BlockSpec((1, 4 * dp), lambda i: (0, 0)),         # fused node biases
            pl.BlockSpec((dp, dp), lambda i: (0, 0)),            # edge-gate weight
            pl.BlockSpec((1, dp), lambda i: (0, 0)),             # edge-gate bias
            pl.BlockSpec((4, dp), lambda i: (0, 0)),             # LN gamma/beta
        ],
        out_specs=(
            pl.BlockSpec((n, dp), lambda i: (0, 0)),             # new node feats
            pl.BlockSpec((edge_tile, dp), lambda i: (i, 0)),     # new edge feats tile
        ),
        scratch_shapes=[
            pltpu.VMEM((n, 4 * dp), jnp.float32),                # node_lin
            pltpu.VMEM((2 * n, 2 * dp), jnp.float32),            # gather RHS
            pltpu.VMEM((n, 2 * dp), jnp.float32),                # scatter accumulator
            pltpu.VMEM((edge_tile, 2 * dp), jnp.float32),        # scatter RHS tile
        ],
    )
    flops = 2 * (n * dp * 4 * dp            # fused node linear
                 + e_pad * 2 * n * 2 * dp   # fused gather
                 + e_pad * dp * dp          # edge-gate linear
                 + e_pad * n * 2 * dp)      # scatter
    bytes_accessed = 4 * (2 * nf.size + 2 * ef.size + inc.size + w_node.size
                          + b_node.size + w_eg.size + b_eg.size + ln.size)
    return pl.pallas_call(
        functools.partial(_egc_kernel, d_real=d_real),
        out_shape=(jax.ShapeDtypeStruct((n, dp), jnp.float32),
                   jax.ShapeDtypeStruct((e_pad, dp), jnp.float32)),
        grid_spec=grid_spec,
        compiler_params=pltpu.CompilerParams(
            dimension_semantics=("arbitrary",),        # carries the scatter accumulator
            vmem_limit_bytes=48 * 1024 * 1024),        # headroom under v7x 64 MiB/TC
        cost_estimate=pl.CostEstimate(
            flops=flops,
            transcendentals=4 * e_pad * dp + 2 * n * dp,
            bytes_accessed=bytes_accessed),
    )(nf, ef, inc, w_node, b_node, w_eg, b_eg, ln)


# -----------------------------------------------------------------------------
# Parameter packing: fuse the 4 node linears, pad everything to lane-dense dp.
# -----------------------------------------------------------------------------
def pack_egc_params(p, d, dp):
    pw = lambda w: jnp.pad(w, ((0, dp - d), (0, dp - d)))
    pb = lambda b: jnp.pad(b, ((0, 0), (0, dp - d)))
    # column layout must match the kernel: [ e_src | Bh | e_dst | Uh ]
    w_node = jnp.concatenate([pw(p["w_src_gate"]), pw(p["w_dst_update"]),
                              pw(p["w_dst_gate"]), pw(p["w_src_update"])], axis=1)
    b_node = jnp.concatenate([pb(p["b_src_gate"]), pb(p["b_dst_update"]),
                              pb(p["b_dst_gate"]), pb(p["b_src_update"])], axis=1)
    ln = jnp.concatenate([pb(p["ln_nodes_g"]), pb(p["ln_nodes_b"]),
                          pb(p["ln_edges_g"]), pb(p["ln_edges_b"])], axis=0)
    return (w_node, b_node, pw(p["w_edge_gate"]), pb(p["b_edge_gate"]), ln)


def alignn_layer(x, y, z, g_src, g_dst, lg_src, lg_dst,
                 edge_params, atom_params, *, edge_tile=256):
    """ALIGNNLayer.forward:
         (y, z) = edge_update(lg, y, z)   # line graph: nodes = bonds, edges = triplets
         (x, y) = atom_update(g,  x, y)   # atom graph: nodes = atoms, edges = bonds
    """
    n, d = x.shape
    e = y.shape[0]
    t = z.shape[0]
    dp = _round_up(d, LANE)            # lane-dense feature dim
    e_pad = _round_up(e, edge_tile)    # row-pad edge axes to the tile size
    t_pad = _round_up(t, edge_tile)

    pad_cols = lambda a: jnp.pad(a, ((0, 0), (0, dp - d)))
    pad_rows = lambda a, r: jnp.pad(a, ((0, r - a.shape[0]), (0, 0)))

    def incidence(src_idx, dst_idx, n_nodes, rows):
        # Stacked dense incidence [rows, 2*n_nodes] = [ one_hot(dst) | one_hot(src) ].
        inc = jnp.concatenate(
            [jax.nn.one_hot(dst_idx, n_nodes, dtype=jnp.float32),
             jax.nn.one_hot(src_idx, n_nodes, dtype=jnp.float32)], axis=1)
        return pad_rows(inc, rows)

    g_inc = incidence(g_src, g_dst, n, e_pad)       # [e_pad, 2n]
    lg_inc = incidence(lg_src, lg_dst, e, t_pad)    # [t_pad, 2e]

    ep = pack_egc_params(edge_params, d, dp)
    ap = pack_egc_params(atom_params, d, dp)

    xp, yp, zp = pad_cols(x), pad_cols(y), pad_cols(z)

    # Pass 1: edge_update on the line graph (nodes = bonds y, edges = triplets z).
    y1, z1 = _egc_pass(yp, pad_rows(zp, t_pad), lg_inc, ep,
                       d_real=d, edge_tile=edge_tile)
    # Pass 2: atom_update on the atom graph (nodes = atoms x, edges = bonds y1).
    # y1 makes one small HBM round-trip so each pass tiles independently.
    x1, y2 = _egc_pass(xp, pad_rows(y1, e_pad), g_inc, ap,
                       d_real=d, edge_tile=edge_tile)

    return x1[:, :d], y2[:e, :d], z1[:t, :d]


# -----------------------------------------------------------------------------
# Pure-JAX reference (f32, standard LayerNorm, scatter_add), mirrors PyTorch.
# -----------------------------------------------------------------------------
def _egc_ref(nf, ef, src_idx, dst_idx, p):
    lin = lambda v, w, b: jnp.dot(v, w) + b
    e_src = lin(nf, p["w_src_gate"], p["b_src_gate"])
    e_dst = lin(nf, p["w_dst_gate"], p["b_dst_gate"])
    bh = lin(nf, p["w_dst_update"], p["b_dst_update"])
    m = e_src[src_idx] + e_dst[dst_idx] + lin(ef, p["w_edge_gate"], p["b_edge_gate"])
    sigma = jax.nn.sigmoid(m)
    n, d = nf.shape
    sum_sigma_h = jnp.zeros((n, d), jnp.float32).at[dst_idx].add(bh[src_idx] * sigma)
    sum_sigma = jnp.zeros((n, d), jnp.float32).at[dst_idx].add(sigma)
    h = sum_sigma_h / (sum_sigma + 1e-6)
    xu = lin(nf, p["w_src_update"], p["b_src_update"]) + h

    def ln_silu(v, g, b):
        mu = jnp.mean(v, -1, keepdims=True)
        var = jnp.mean(jnp.square(v - mu), -1, keepdims=True)
        vn = (v - mu) * jax.lax.rsqrt(var + 1e-5) * g + b
        return vn * jax.nn.sigmoid(vn)

    return (nf + ln_silu(xu, p["ln_nodes_g"], p["ln_nodes_b"]),
            ef + ln_silu(m, p["ln_edges_g"], p["ln_edges_b"]))


def make_egc_params(key, d):
    keys = jax.random.split(key, 10)
    bound = 1.0 / jnp.sqrt(d)
    u = lambda k, shape: jax.random.uniform(k, shape, jnp.float32, -bound, bound)
    return {
        "w_src_gate": u(keys[0], (d, d)),   "b_src_gate": u(keys[1], (1, d)),
        "w_dst_gate": u(keys[2], (d, d)),   "b_dst_gate": u(keys[3], (1, d)),
        "w_edge_gate": u(keys[4], (d, d)),  "b_edge_gate": u(keys[5], (1, d)),
        "w_src_update": u(keys[6], (d, d)), "b_src_update": u(keys[7], (1, d)),
        "w_dst_update": u(keys[8], (d, d)), "b_dst_update": u(keys[9], (1, d)),
        "ln_nodes_g": jnp.ones((1, d), jnp.float32),
        "ln_nodes_b": jnp.zeros((1, d), jnp.float32),
        "ln_edges_g": jnp.ones((1, d), jnp.float32),
        "ln_edges_b": jnp.zeros((1, d), jnp.float32),
    }


if __name__ == "__main__":
    D = 32          # feature_dims
    N = 16          # atoms          (nodes of g)
    E = 32          # bonds          (edges of g  == nodes of lg)
    T = 48          # angle triplets (edges of lg)

    key = jax.random.PRNGKey(0)
    k_feat, k_graph, k_pe, k_pa = jax.random.split(key, 4)
    kx, ky, kz = jax.random.split(k_feat, 3)

    x = jax.random.normal(kx, (N, D), jnp.float32)   # atom features
    y = jax.random.normal(ky, (E, D), jnp.float32)   # bond features
    z = jax.random.normal(kz, (T, D), jnp.float32)   # angle features

    kg1, kg2, kl1, kl2 = jax.random.split(k_graph, 4)
    g_src = jax.random.randint(kg1, (E,), 0, N)
    g_dst = jax.random.randint(kg2, (E,), 0, N)
    lg_src = jax.random.randint(kl1, (T,), 0, E)
    lg_dst = jax.random.randint(kl2, (T,), 0, E)

    edge_params = make_egc_params(k_pe, D)   # ALIGNNLayer.edge_update
    atom_params = make_egc_params(k_pa, D)   # ALIGNNLayer.atom_update

    # edge_tile=16 exercises the multi-tile grid at these toy sizes;
    # use >=256-row tiles (the default) for realistic graphs.
    run = jax.jit(functools.partial(alignn_layer, edge_tile=16))
    x_out, y_out, z_out = run(x, y, z, g_src, g_dst, lg_src, lg_dst,
                              edge_params, atom_params)
    jax.block_until_ready((x_out, y_out, z_out))

    # sanity check against the pure-JAX reference
    y_ref, z_ref = _egc_ref(y, z, lg_src, lg_dst, edge_params)
    x_ref, y_ref = _egc_ref(x, y_ref, g_src, g_dst, atom_params)
    assert jnp.allclose(x_out, x_ref, rtol=2e-2, atol=2e-2), "x mismatch"
    assert jnp.allclose(y_out, y_ref, rtol=2e-2, atol=2e-2), "y mismatch"
    assert jnp.allclose(z_out, z_ref, rtol=2e-2, atol=2e-2), "z mismatch"

    print("KERNEL_OK")
</pallas_src>

<mosaic_0001>
module attributes {stable_mosaic.version = 11 : i64} {
  func.func @_egc_kernel(%arg0: i32, %arg1: memref<16x128xf32, #tpu.memory_space<vmem>>, %arg2: memref<16x128xf32, #tpu.memory_space<vmem>>, %arg3: memref<16x32xf32, #tpu.memory_space<vmem>>, %arg4: memref<128x512xf32, #tpu.memory_space<vmem>>, %arg5: memref<1x512xf32, #tpu.memory_space<vmem>>, %arg6: memref<128x128xf32, #tpu.memory_space<vmem>>, %arg7: memref<1x128xf32, #tpu.memory_space<vmem>>, %arg8: memref<4x128xf32, #tpu.memory_space<vmem>>, %arg9: memref<16x128xf32, #tpu.memory_space<vmem>>, %arg10: memref<16x128xf32, #tpu.memory_space<vmem>>, %arg11: memref<16x512xf32, #tpu.memory_space<vmem>>, %arg12: memref<32x256xf32, #tpu.memory_space<vmem>>, %arg13: memref<16x256xf32, #tpu.memory_space<vmem>>, %arg14: memref<16x256xf32, #tpu.memory_space<vmem>>) attributes {dimension_semantics = [#tpu.dimension_semantics<arbitrary>], iteration_bounds = array<i64: 2>, scalar_prefetch = 0 : i64, scratch_operands = 4 : i64, tpu.core_type = #tpu.core_type<tc>, window_params = [{pipeline_mode = #tpu.pipeline_mode<synchronous>, transform_indices = @transform_0, window_bounds = array<i64: 16, 128>}, {transform_indices = @transform_1, window_bounds = array<i64: 16, 128>}, {transform_indices = @transform_2, window_bounds = array<i64: 16, 32>}, {pipeline_mode = #tpu.pipeline_mode<synchronous>, transform_indices = @transform_3, window_bounds = array<i64: 128, 512>}, {pipeline_mode = #tpu.pipeline_mode<synchronous>, transform_indices = @transform_4, window_bounds = array<i64: 1, 512>}, {pipeline_mode = #tpu.pipeline_mode<synchronous>, transform_indices = @transform_5, window_bounds = array<i64: 128, 128>}, {pipeline_mode = #tpu.pipeline_mode<synchronous>, transform_indices = @transform_6, window_bounds = array<i64: 1, 128>}, {pipeline_mode = #tpu.pipeline_mode<synchronous>, transform_indices = @transform_7, window_bounds = array<i64: 4, 128>}, {pipeline_mode = #tpu.pipeline_mode<synchronous>, transform_indices = @transform_8, window_bounds = array<i64: 16, 128>}, {transform_indices = @transform_9, window_bounds = array<i64: 16, 128>}]} {
    %c0 = arith.constant 0 : index
    %c0_0 = arith.constant 0 : index
    %0 = vector.load %arg8[%c0, %c0_0] : memref<4x128xf32, #tpu.memory_space<vmem>>, vector<4x128xf32>
    %c0_i32 = arith.constant 0 : i32
    %1 = arith.cmpi eq, %arg0, %c0_i32 : i32
    %2 = arith.extui %1 : i1 to i32
    %c0_i32_1 = arith.constant 0 : i32
    %3 = arith.cmpi ne, %2, %c0_i32_1 : i32
    scf.if %3 {
      %c0_36 = arith.constant 0 : index
      %c0_37 = arith.constant 0 : index
      %68 = vector.load %arg1[%c0_36, %c0_37] : memref<16x128xf32, #tpu.memory_space<vmem>>, vector<16x128xf32>
      %c0_38 = arith.constant 0 : index
      %c0_39 = arith.constant 0 : index
      %69 = vector.load %arg4[%c0_38, %c0_39] : memref<128x512xf32, #tpu.memory_space<vmem>>, vector<128x512xf32>
      %cst_40 = arith.constant dense<0.000000e+00> : vector<16x512xf32>
      %70 = tpu.matmul %68, %69, %cst_40 {dimension_numbers = #tpu.dot_dimension_numbers<[1], [0], [0], [1], [0, 0, 1, 1], [], []>} : vector<16x128xf32>, vector<128x512xf32>, vector<16x512xf32> -> vector<16x512xf32>
      %c0_41 = arith.constant 0 : index
      %c0_42 = arith.constant 0 : index
      %71 = vector.load %arg5[%c0_41, %c0_42] : memref<1x512xf32, #tpu.memory_space<vmem>>, vector<1x512xf32>
      %72 = vector.broadcast %71 : vector<1x512xf32> to vector<16x512xf32>
      %73 = arith.addf %70, %72 : vector<16x512xf32>
      %c0_43 = arith.constant 0 : index
      %c0_44 = arith.constant 0 : index
      %74 = vector.load %arg11[%c0_43, %c0_44] : memref<16x512xf32, #tpu.memory_space<vmem>>, vector<16x512xf32>
      tpu.vector_store %arg11[%c0_43, %c0_44], %73 {strides = array<i32>} : memref<16x512xf32, #tpu.memory_space<vmem>>, vector<16x512xf32>,
      %75 = vector.extract_strided_slice %73 {offsets = [0, 256], sizes = [16, 128], strides = [1, 1]} : vector<16x512xf32> to vector<16x128xf32>
      %c0_45 = arith.constant 0 : index
      %c0_46 = arith.constant 0 : index
      %76 = vector.load %arg12[%c0_45, %c0_46] : memref<32x256xf32, #tpu.memory_space<vmem>>, vector<16x128xf32>
      tpu.vector_store %arg12[%c0_45, %c0_46], %75 {strides = array<i32>} : memref<32x256xf32, #tpu.memory_space<vmem>>, vector<16x128xf32>,
      %cst_47 = arith.constant 0.000000e+00 : f32
      %77 = vector.broadcast %cst_47 : f32 to vector<16x128xf32>
      %c0_48 = arith.constant 0 : index
      %c128_49 = arith.constant 128 : index
      %78 = vector.load %arg12[%c0_48, %c128_49] : memref<32x256xf32, #tpu.memory_space<vmem>>, vector<16x128xf32>
      tpu.vector_store %arg12[%c0_48, %c128_49], %77 {strides = array<i32>} : memref<32x256xf32, #tpu.memory_space<vmem>>, vector<16x128xf32>,
      %79 = vector.extract_strided_slice %73 {offsets = [0, 0], sizes = [16, 256], strides = [1, 1]} : vector<16x512xf32> to vector<16x256xf32>
      %c16 = arith.constant 16 : index
      %c0_50 = arith.constant 0 : index
      %80 = vector.load %arg12[%c16, %c0_50] : memref<32x256xf32, #tpu.memory_space<vmem>>, vector<16x256xf32>
      tpu.vector_store %arg12[%c16, %c0_50], %79 {strides = array<i32>} : memref<32x256xf32, #tpu.memory_space<vmem>>, vector<16x256xf32>,
      %cst_51 = arith.constant 0.000000e+00 : f32
      %81 = vector.broadcast %cst_51 : f32 to vector<16x256xf32>
      %c0_52 = arith.constant 0 : index
      %c0_53 = arith.constant 0 : index
      %82 = vector.load %arg13[%c0_52, %c0_53] : memref<16x256xf32, #tpu.memory_space<vmem>>, vector<16x256xf32>
      tpu.vector_store %arg13[%c0_52, %c0_53], %81 {strides = array<i32>} : memref<16x256xf32, #tpu.memory_space<vmem>>, vector<16x256xf32>,
    } else {
    }
    %c0_2 = arith.constant 0 : index
    %c0_3 = arith.constant 0 : index
    %4 = vector.load %arg3[%c0_2, %c0_3] : memref<16x32xf32, #tpu.memory_space<vmem>>, vector<16x32xf32>
    %c0_4 = arith.constant 0 : index
    %c0_5 = arith.constant 0 : index
    %5 = vector.load %arg12[%c0_4, %c0_5] : memref<32x256xf32, #tpu.memory_space<vmem>>, vector<32x256xf32>
    %cst = arith.constant dense<0.000000e+00> : vector<16x256xf32>
    %6 = tpu.matmul %4, %5, %cst {dimension_numbers = #tpu.dot_dimension_numbers<[1], [0], [0], [1], [0, 0, 1, 1], [], []>} : vector<16x32xf32>, vector<32x256xf32>, vector<16x256xf32> -> vector<16x256xf32>
    %7 = vector.extract_strided_slice %6 {offsets = [0, 0], sizes = [16, 128], strides = [1, 1]} : vector<16x256xf32> to vector<16x128xf32>
    %c0_6 = arith.constant 0 : index
    %c0_7 = arith.constant 0 : index
    %8 = vector.load %arg2[%c0_6, %c0_7] : memref<16x128xf32, #tpu.memory_space<vmem>>, vector<16x128xf32>
    %c0_8 = arith.constant 0 : index
    %c0_9 = arith.constant 0 : index
    %9 = vector.load %arg6[%c0_8, %c0_9] : memref<128x128xf32, #tpu.memory_space<vmem>>, vector<128x128xf32>
    %cst_10 = arith.constant dense<0.000000e+00> : vector<16x128xf32>
    %10 = tpu.matmul %8, %9, %cst_10 {dimension_numbers = #tpu.dot_dimension_numbers<[1], [0], [0], [1], [0, 0, 1, 1], [], []>} : vector<16x128xf32>, vector<128x128xf32>, vector<16x128xf32> -> vector<16x128xf32>
    %11 = arith.addf %7, %10 : vector<16x128xf32>
    %c0_11 = arith.constant 0 : index
    %c0_12 = arith.constant 0 : index
    %12 = vector.load %arg7[%c0_11, %c0_12] : memref<1x128xf32, #tpu.memory_space<vmem>>, vector<1x128xf32>
    %13 = vector.broadcast %12 : vector<1x128xf32> to vector<16x128xf32>
    %14 = arith.addf %11, %13 : vector<16x128xf32>
    %15 = arith.negf %14 : vector<16x128xf32>
    %16 = math.exp %15 : vector<16x128xf32>
    %cst_13 = arith.constant 1.000000e+00 : f32
    %17 = vector.broadcast %cst_13 : f32 to vector<16x128xf32>
    %18 = arith.addf %17, %16 : vector<16x128xf32>
    %19 = arith.divf %17, %18 : vector<16x128xf32>
    %20 = vector.extract_strided_slice %6 {offsets = [0, 128], sizes = [16, 128], strides = [1, 1]} : vector<16x256xf32> to vector<16x128xf32>
    %21 = arith.mulf %20, %19 : vector<16x128xf32>
    %c0_14 = arith.constant 0 : index
    %c0_15 = arith.constant 0 : index
    %22 = vector.load %arg14[%c0_14, %c0_15] : memref<16x256xf32, #tpu.memory_space<vmem>>, vector<16x128xf32>
    tpu.vector_store %arg14[%c0_14, %c0_15], %21 {strides = array<i32>} : memref<16x256xf32, #tpu.memory_space<vmem>>, vector<16x128xf32>,
    %c0_16 = arith.constant 0 : index
    %c128 = arith.constant 128 : index
    %23 = vector.load %arg14[%c0_16, %c128] : memref<16x256xf32, #tpu.memory_space<vmem>>, vector<16x128xf32>
    tpu.vector_store %arg14[%c0_16, %c128], %19 {strides = array<i32>} : memref<16x256xf32, #tpu.memory_space<vmem>>, vector<16x128xf32>,
    %c0_17 = arith.constant 0 : index
    %c0_18 = arith.constant 0 : index
    %24 = vector.load %arg13[%c0_17, %c0_18] : memref<16x256xf32, #tpu.memory_space<vmem>>, vector<16x256xf32>
    %25 = vector.extract_strided_slice %4 {offsets = [0, 0], sizes = [16, 16], strides = [1, 1]} : vector<16x32xf32> to vector<16x16xf32>
    %c0_19 = arith.constant 0 : index
    %c0_20 = arith.constant 0 : index
    %26 = vector.load %arg14[%c0_19, %c0_20] : memref<16x256xf32, #tpu.memory_space<vmem>>, vector<16x256xf32>
    %cst_21 = arith.constant dense<0.000000e+00> : vector<16x256xf32>
    %27 = tpu.matmul %25, %26, %cst_21 {dimension_numbers = #tpu.dot_dimension_numbers<[0], [0], [1], [1], [0, 1, 1, 1], [], []>} : vector<16x16xf32>, vector<16x256xf32>, vector<16x256xf32> -> vector<16x256xf32>
    %28 = arith.addf %24, %27 : vector<16x256xf32>
    %c0_22 = arith.constant 0 : index
    %c0_23 = arith.constant 0 : index
    %29 = vector.load %arg13[%c0_22, %c0_23] : memref<16x256xf32, #tpu.memory_space<vmem>>, vector<16x256xf32>
    tpu.vector_store %arg13[%c0_22, %c0_23], %28 {strides = array<i32>} : memref<16x256xf32, #tpu.memory_space<vmem>>, vector<16x256xf32>,
    %c0_24 = arith.constant 0 : index
    %c0_25 = arith.constant 0 : index
    %30 = vector.load %arg2[%c0_24, %c0_25] : memref<16x128xf32, #tpu.memory_space<vmem>>, vector<16x128xf32>
    %31 = vector.extract_strided_slice %0 {offsets = [2, 0], sizes = [1, 128], strides = [1, 1]} : vector<4x128xf32> to vector<1x128xf32>
    %32 = vector.extract_strided_slice %0 {offsets = [3, 0], sizes = [1, 128], strides = [1, 1]} : vector<4x128xf32> to vector<1x128xf32>
    %cst_26 = arith.constant dense<0.000000e+00> : vector<16xf32>
    %33 = vector.multi_reduction <add>, %14, %cst_26 [1] : vector<16x128xf32> to vector<16xf32>
    %34 = vector.shape_cast %33 : vector<16xf32> to vector<16x1xf32>
    %cst_27 = arith.constant 3.125000e-02 : f32
    %35 = vector.broadcast %cst_27 : f32 to vector<16x1xf32>
    %36 = arith.mulf %34, %35 : vector<16x1xf32>
    %37 = arith.mulf %14, %14 : vector<16x128xf32>
    %cst_28 = arith.constant dense<0.000000e+00> : vector<16xf32>
    %38 = vector.multi_reduction <add>, %37, %cst_28 [1] : vector<16x128xf32> to vector<16xf32>
    %39 = vector.shape_cast %38 : vector<16xf32> to vector<16x1xf32>
    %cst_29 = arith.constant 3.125000e-02 : f32
    %40 = vector.broadcast %cst_29 : f32 to vector<16x1xf32>
    %41 = arith.mulf %39, %40 : vector<16x1xf32>
    %42 = arith.mulf %36, %36 : vector<16x1xf32>
    %43 = arith.subf %41, %42 : vector<16x1xf32>
    %cst_30 = arith.constant 0.000000e+00 : f32
    %44 = vector.broadcast %cst_30 : f32 to vector<16x1xf32>
    %45 = arith.maximumf %43, %44 : vector<16x1xf32>
    %46 = vector.broadcast %36 : vector<16x1xf32> to vector<16x128xf32>
    %47 = arith.subf %14, %46 : vector<16x128xf32>
    %cst_31 = arith.constant 9.99999974E-6 : f32
    %48 = vector.broadcast %cst_31 : f32 to vector<16x1xf32>
    %49 = arith.addf %45, %48 : vector<16x1xf32>
    %50 = math.rsqrt %49 : vector<16x1xf32>
    %51 = vector.broadcast %50 : vector<16x1xf32> to vector<16x128xf32>
    %52 = arith.mulf %47, %51 : vector<16x128xf32>
    %53 = vector.broadcast %31 : vector<1x128xf32> to vector<16x128xf32>
    %54 = arith.mulf %52, %53 : vector<16x128xf32>
    %55 = vector.broadcast %32 : vector<1x128xf32> to vector<16x128xf32>
    %56 = arith.addf %54, %55 : vector<16x128xf32>
    %57 = arith.negf %56 : vector<16x128xf32>
    %58 = math.exp %57 : vector<16x128xf32>
    %cst_32 = arith.constant 1.000000e+00 : f32
    %59 = vector.broadcast %cst_32 : f32 to vector<16x128xf32>
    %60 = arith.addf %59, %58 : vector<16x128xf32>
    %61 = arith.divf %59, %60 : vector<16x128xf32>
    %62 = arith.mulf %56, %61 : vector<16x128xf32>
    %63 = arith.addf %30, %62 : vector<16x128xf32>
    %c0_33 = arith.constant 0 : index
    %c0_34 = arith.constant 0 : index
    %64 = vector.load %arg10[%c0_33, %c0_34] : memref<16x128xf32, #tpu.memory_space<vmem>>, vector<16x128xf32>
    tpu.vector_store %arg10[%c0_33, %c0_34], %63 {strides = array<i32>} : memref<16x128xf32, #tpu.memory_space<vmem>>, vector<16x128xf32>,
    %c1_i32 = arith.constant 1 : i32
    %65 = arith.cmpi eq, %arg0, %c1_i32 : i32
    %66 = arith.extui %65 : i1 to i32
    %c0_i32_35 = arith.constant 0 : i32
    %67 = arith.cmpi ne, %66, %c0_i32_35 : i32
    scf.if %67 {
      %c0_36 = arith.constant 0 : index
      %c0_37 = arith.constant 0 : index
      %68 = vector.load %arg13[%c0_36, %c0_37] : memref<16x256xf32, #tpu.memory_space<vmem>>, vector<16x128xf32>
      %c0_38 = arith.constant 0 : index
      %c128_39 = arith.constant 128 : index
      %69 = vector.load %arg13[%c0_38, %c128_39] : memref<16x256xf32, #tpu.memory_space<vmem>>, vector<16x128xf32>
      %cst_40 = arith.constant 9.99999997E-7 : f32
      %70 = vector.broadcast %cst_40 : f32 to vector<16x128xf32>
      %71 = arith.addf %69, %70 : vector<16x128xf32>
      %72 = arith.divf %68, %71 : vector<16x128xf32>
      %c0_41 = arith.constant 0 : index
      %c384 = arith.constant 384 : index
      %73 = vector.load %arg11[%c0_41, %c384] : memref<16x512xf32, #tpu.memory_space<vmem>>, vector<16x128xf32>
      %74 = arith.addf %73, %72 : vector<16x128xf32>
      %c0_42 = arith.constant 0 : index
      %c0_43 = arith.constant 0 : index
      %75 = vector.load %arg1[%c0_42, %c0_43] : memref<16x128xf32, #tpu.memory_space<vmem>>, vector<16x128xf32>
      %76 = vector.extract_strided_slice %0 {offsets = [0, 0], sizes = [1, 128], strides = [1, 1]} : vector<4x128xf32> to vector<1x128xf32>
      %77 = vector.extract_strided_slice %0 {offsets = [1, 0], sizes = [1, 128], strides = [1, 1]} : vector<4x128xf32> to vector<1x128xf32>
      %cst_44 = arith.constant dense<0.000000e+00> : vector<16xf32>
      %78 = vector.multi_reduction <add>, %74, %cst_44 [1] : vector<16x128xf32> to vector<16xf32>
      %79 = vector.shape_cast %78 : vector<16xf32> to vector<16x1xf32>
      %cst_45 = arith.constant 3.125000e-02 : f32
      %80 = vector.broadcast %cst_45 : f32 to vector<16x1xf32>
      %81 = arith.mulf %79, %80 : vector<16x1xf32>
      %82 = arith.mulf %74, %74 : vector<16x128xf32>
      %cst_46 = arith.constant dense<0.000000e+00> : vector<16xf32>
      %83 = vector.multi_reduction <add>, %82, %cst_46 [1] : vector<16x128xf32> to vector<16xf32>
      %84 = vector.shape_cast %83 : vector<16xf32> to vector<16x1xf32>
      %cst_47 = arith.constant 3.125000e-02 : f32
      %85 = vector.broadcast %cst_47 : f32 to vector<16x1xf32>
      %86 = arith.mulf %84, %85 : vector<16x1xf32>
      %87 = arith.mulf %81, %81 : vector<16x1xf32>
      %88 = arith.subf %86, %87 : vector<16x1xf32>
      %cst_48 = arith.constant 0.000000e+00 : f32
      %89 = vector.broadcast %cst_48 : f32 to vector<16x1xf32>
      %90 = arith.maximumf %88, %89 : vector<16x1xf32>
      %91 = vector.broadcast %81 : vector<16x1xf32> to vector<16x128xf32>
      %92 = arith.subf %74, %91 : vector<16x128xf32>
      %cst_49 = arith.constant 9.99999974E-6 : f32
      %93 = vector.broadcast %cst_49 : f32 to vector<16x1xf32>
      %94 = arith.addf %90, %93 : vector<16x1xf32>
      %95 = math.rsqrt %94 : vector<16x1xf32>
      %96 = vector.broadcast %95 : vector<16x1xf32> to vector<16x128xf32>
      %97 = arith.mulf %92, %96 : vector<16x128xf32>
      %98 = vector.broadcast %76 : vector<1x128xf32> to vector<16x128xf32>
      %99 = arith.mulf %97, %98 : vector<16x128xf32>
      %100 = vector.broadcast %77 : vector<1x128xf32> to vector<16x128xf32>
      %101 = arith.addf %99, %100 : vector<16x128xf32>
      %102 = arith.negf %101 : vector<16x128xf32>
      %103 = math.exp %102 : vector<16x128xf32>
      %cst_50 = arith.constant 1.000000e+00 : f32
      %104 = vector.broadcast %cst_50 : f32 to vector<16x128xf32>
      %105 = arith.addf %104, %103 : vector<16x128xf32>
      %106 = arith.divf %104, %105 : vector<16x128xf32>
      %107 = arith.mulf %101, %106 : vector<16x128xf32>
      %108 = arith.addf %75, %107 : vector<16x128xf32>
      %c0_51 = arith.constant 0 : index
      %c0_52 = arith.constant 0 : index
      %109 = vector.load %arg9[%c0_51, %c0_52] : memref<16x128xf32, #tpu.memory_space<vmem>>, vector<16x128xf32>
      tpu.vector_store %arg9[%c0_51, %c0_52], %108 {strides = array<i32>} : memref<16x128xf32, #tpu.memory_space<vmem>>, vector<16x128xf32>,
    } else {
    }
    return
  }
  func.func @transform_0(%arg0: i32) -> (i32, i32) {
    %c0_i32 = arith.constant 0 : i32
    %c0_i32_0 = arith.constant 0 : i32
    %c0_i32_1 = arith.constant 0 : i32
    return %c0_i32, %c0_i32_0 : i32, i32
  }
  func.func @transform_1(%arg0: i32) -> (i32, i32) {
    %c0_i32 = arith.constant 0 : i32
    %c0_i32_0 = arith.constant 0 : i32
    return %arg0, %c0_i32 : i32, i32
  }
  func.func @transform_2(%arg0: i32) -> (i32, i32) {
    %c0_i32 = arith.constant 0 : i32
    %c0_i32_0 = arith.constant 0 : i32
    return %arg0, %c0_i32 : i32, i32
  }
  func.func @transform_3(%arg0: i32) -> (i32, i32) {
    %c0_i32 = arith.constant 0 : i32
    %c0_i32_0 = arith.constant 0 : i32
    %c0_i32_1 = arith.constant 0 : i32
    return %c0_i32, %c0_i32_0 : i32, i32
  }
  func.func @transform_4(%arg0: i32) -> (i32, i32) {
    %c0_i32 = arith.constant 0 : i32
    %c0_i32_0 = arith.constant 0 : i32
    %c0_i32_1 = arith.constant 0 : i32
    return %c0_i32, %c0_i32_0 : i32, i32
  }
  func.func @transform_5(%arg0: i32) -> (i32, i32) {
    %c0_i32 = arith.constant 0 : i32
    %c0_i32_0 = arith.constant 0 : i32
    %c0_i32_1 = arith.constant 0 : i32
    return %c0_i32, %c0_i32_0 : i32, i32
  }
  func.func @transform_6(%arg0: i32) -> (i32, i32) {
    %c0_i32 = arith.constant 0 : i32
    %c0_i32_0 = arith.constant 0 : i32
    %c0_i32_1 = arith.constant 0 : i32
    return %c0_i32, %c0_i32_0 : i32, i32
  }
  func.func @transform_7(%arg0: i32) -> (i32, i32) {
    %c0_i32 = arith.constant 0 : i32
    %c0_i32_0 = arith.constant 0 : i32
    %c0_i32_1 = arith.constant 0 : i32
    return %c0_i32, %c0_i32_0 : i32, i32
  }
  func.func @transform_8(%arg0: i32) -> (i32, i32) {
    %c0_i32 = arith.constant 0 : i32
    %c0_i32_0 = arith.constant 0 : i32
    %c0_i32_1 = arith.constant 0 : i32
    return %c0_i32, %c0_i32_0 : i32, i32
  }
  func.func @transform_9(%arg0: i32) -> (i32, i32) {
    %c0_i32 = arith.constant 0 : i32
    %c0_i32_0 = arith.constant 0 : i32
    return %arg0, %c0_i32 : i32, i32
  }
}

module attributes {stable_mosaic.version = 11 : i64} {
  func.func @_egc_kernel(%arg0: i32, %arg1: memref<32x128xf32, #tpu.memory_space<vmem>>, %arg2: memref<16x128xf32, #tpu.memory_space<vmem>>, %arg3: memref<16x64xf32, #tpu.memory_space<vmem>>, %arg4: memref<128x512xf32, #tpu.memory_space<vmem>>, %arg5: memref<1x512xf32, #tpu.memory_space<vmem>>, %arg6: memref<128x128xf32, #tpu.memory_space<vmem>>, %arg7: memref<1x128xf32, #tpu.memory_space<vmem>>, %arg8: memref<4x128xf32, #tpu.memory_space<vmem>>, %arg9: memref<32x128xf32, #tpu.memory_space<vmem>>, %arg10: memref<16x128xf32, #tpu.memory_space<vmem>>, %arg11: memref<32x512xf32, #tpu.memory_space<vmem>>, %arg12: memref<64x256xf32, #tpu.memory_space<vmem>>, %arg13: memref<32x256xf32, #tpu.memory_space<vmem>>, %arg14: memref<16x256xf32, #tpu.memory_space<vmem>>) attributes {dimension_semantics = [#tpu.dimension_semantics<arbitrary>], iteration_bounds = array<i64: 3>, scalar_prefetch = 0 : i64, scratch_operands = 4 : i64, tpu.core_type = #tpu.core_type<tc>, window_params = [{pipeline_mode = #tpu.pipeline_mode<synchronous>, transform_indices = @transform_0, window_bounds = array<i64: 32, 128>}, {transform_indices = @transform_1, window_bounds = array<i64: 16, 128>}, {transform_indices = @transform_2, window_bounds = array<i64: 16, 64>}, {pipeline_mode = #tpu.pipeline_mode<synchronous>, transform_indices = @transform_3, window_bounds = array<i64: 128, 512>}, {pipeline_mode = #tpu.pipeline_mode<synchronous>, transform_indices = @transform_4, window_bounds = array<i64: 1, 512>}, {pipeline_mode = #tpu.pipeline_mode<synchronous>, transform_indices = @transform_5, window_bounds = array<i64: 128, 128>}, {pipeline_mode = #tpu.pipeline_mode<synchronous>, transform_indices = @transform_6, window_bounds = array<i64: 1, 128>}, {pipeline_mode = #tpu.pipeline_mode<synchronous>, transform_indices = @transform_7, window_bounds = array<i64: 4, 128>}, {pipeline_mode = #tpu.pipeline_mode<synchronous>, transform_indices = @transform_8, window_bounds = array<i64: 32, 128>}, {transform_indices = @transform_9, window_bounds = array<i64: 16, 128>}]} {
    %c0 = arith.constant 0 : index
    %c0_0 = arith.constant 0 : index
    %0 = vector.load %arg8[%c0, %c0_0] : memref<4x128xf32, #tpu.memory_space<vmem>>, vector<4x128xf32>
    %c0_i32 = arith.constant 0 : i32
    %1 = arith.cmpi eq, %arg0, %c0_i32 : i32
    %2 = arith.extui %1 : i1 to i32
    %c0_i32_1 = arith.constant 0 : i32
    %3 = arith.cmpi ne, %2, %c0_i32_1 : i32
    scf.if %3 {
      %c0_36 = arith.constant 0 : index
      %c0_37 = arith.constant 0 : index
      %68 = vector.load %arg1[%c0_36, %c0_37] : memref<32x128xf32, #tpu.memory_space<vmem>>, vector<32x128xf32>
      %c0_38 = arith.constant 0 : index
      %c0_39 = arith.constant 0 : index
      %69 = vector.load %arg4[%c0_38, %c0_39] : memref<128x512xf32, #tpu.memory_space<vmem>>, vector<128x512xf32>
      %cst_40 = arith.constant dense<0.000000e+00> : vector<32x512xf32>
      %70 = tpu.matmul %68, %69, %cst_40 {dimension_numbers = #tpu.dot_dimension_numbers<[1], [0], [0], [1], [0, 0, 1, 1], [], []>} : vector<32x128xf32>, vector<128x512xf32>, vector<32x512xf32> -> vector<32x512xf32>
      %c0_41 = arith.constant 0 : index
      %c0_42 = arith.constant 0 : index
      %71 = vector.load %arg5[%c0_41, %c0_42] : memref<1x512xf32, #tpu.memory_space<vmem>>, vector<1x512xf32>
      %72 = vector.broadcast %71 : vector<1x512xf32> to vector<32x512xf32>
      %73 = arith.addf %70, %72 : vector<32x512xf32>
      %c0_43 = arith.constant 0 : index
      %c0_44 = arith.constant 0 : index
      %74 = vector.load %arg11[%c0_43, %c0_44] : memref<32x512xf32, #tpu.memory_space<vmem>>, vector<32x512xf32>
      tpu.vector_store %arg11[%c0_43, %c0_44], %73 {strides = array<i32>} : memref<32x512xf32, #tpu.memory_space<vmem>>, vector<32x512xf32>,
      %75 = vector.extract_strided_slice %73 {offsets = [0, 256], sizes = [32, 128], strides = [1, 1]} : vector<32x512xf32> to vector<32x128xf32>
      %c0_45 = arith.constant 0 : index
      %c0_46 = arith.constant 0 : index
      %76 = vector.load %arg12[%c0_45, %c0_46] : memref<64x256xf32, #tpu.memory_space<vmem>>, vector<32x128xf32>
      tpu.vector_store %arg12[%c0_45, %c0_46], %75 {strides = array<i32>} : memref<64x256xf32, #tpu.memory_space<vmem>>, vector<32x128xf32>,
      %cst_47 = arith.constant 0.000000e+00 : f32
      %77 = vector.broadcast %cst_47 : f32 to vector<32x128xf32>
      %c0_48 = arith.constant 0 : index
      %c128_49 = arith.constant 128 : index
      %78 = vector.load %arg12[%c0_48, %c128_49] : memref<64x256xf32, #tpu.memory_space<vmem>>, vector<32x128xf32>
      tpu.vector_store %arg12[%c0_48, %c128_49], %77 {strides = array<i32>} : memref<64x256xf32, #tpu.memory_space<vmem>>, vector<32x128xf32>,
      %79 = vector.extract_strided_slice %73 {offsets = [0, 0], sizes = [32, 256], strides = [1, 1]} : vector<32x512xf32> to vector<32x256xf32>
      %c32 = arith.constant 32 : index
      %c0_50 = arith.constant 0 : index
      %80 = vector.load %arg12[%c32, %c0_50] : memref<64x256xf32, #tpu.memory_space<vmem>>, vector<32x256xf32>
      tpu.vector_store %arg12[%c32, %c0_50], %79 {strides = array<i32>} : memref<64x256xf32, #tpu.memory_space<vmem>>, vector<32x256xf32>,
      %cst_51 = arith.constant 0.000000e+00 : f32
      %81 = vector.broadcast %cst_51 : f32 to vector<32x256xf32>
      %c0_52 = arith.constant 0 : index
      %c0_53 = arith.constant 0 : index
      %82 = vector.load %arg13[%c0_52, %c0_53] : memref<32x256xf32, #tpu.memory_space<vmem>>, vector<32x256xf32>
      tpu.vector_store %arg13[%c0_52, %c0_53], %81 {strides = array<i32>} : memref<32x256xf32, #tpu.memory_space<vmem>>, vector<32x256xf32>,
    } else {
    }
    %c0_2 = arith.constant 0 : index
    %c0_3 = arith.constant 0 : index
    %4 = vector.load %arg3[%c0_2, %c0_3] : memref<16x64xf32, #tpu.memory_space<vmem>>, vector<16x64xf32>
    %c0_4 = arith.constant 0 : index
    %c0_5 = arith.constant 0 : index
    %5 = vector.load %arg12[%c0_4, %c0_5] : memref<64x256xf32, #tpu.memory_space<vmem>>, vector<64x256xf32>
    %cst = arith.constant dense<0.000000e+00> : vector<16x256xf32>
    %6 = tpu.matmul %4, %5, %cst {dimension_numbers = #tpu.dot_dimension_numbers<[1], [0], [0], [1], [0, 0, 1, 1], [], []>} : vector<16x64xf32>, vector<64x256xf32>, vector<16x256xf32> -> vector<16x256xf32>
    %7 = vector.extract_strided_slice %6 {offsets = [0, 0], sizes = [16, 128], strides = [1, 1]} : vector<16x256xf32> to vector<16x128xf32>
    %c0_6 = arith.constant 0 : index
    %c0_7 = arith.constant 0 : index
    %8 = vector.load %arg2[%c0_6, %c0_7] : memref<16x128xf32, #tpu.memory_space<vmem>>, vector<16x128xf32>
    %c0_8 = arith.constant 0 : index
    %c0_9 = arith.constant 0 : index
    %9 = vector.load %arg6[%c0_8, %c0_9] : memref<128x128xf32, #tpu.memory_space<vmem>>, vector<128x128xf32>
    %cst_10 = arith.constant dense<0.000000e+00> : vector<16x128xf32>
    %10 = tpu.matmul %8, %9, %cst_10 {dimension_numbers = #tpu.dot_dimension_numbers<[1], [0], [0], [1], [0, 0, 1, 1], [], []>} : vector<16x128xf32>, vector<128x128xf32>, vector<16x128xf32> -> vector<16x128xf32>
    %11 = arith.addf %7, %10 : vector<16x128xf32>
    %c0_11 = arith.constant 0 : index
    %c0_12 = arith.constant 0 : index
    %12 = vector.load %arg7[%c0_11, %c0_12] : memref<1x128xf32, #tpu.memory_space<vmem>>, vector<1x128xf32>
    %13 = vector.broadcast %12 : vector<1x128xf32> to vector<16x128xf32>
    %14 = arith.addf %11, %13 : vector<16x128xf32>
    %15 = arith.negf %14 : vector<16x128xf32>
    %16 = math.exp %15 : vector<16x128xf32>
    %cst_13 = arith.constant 1.000000e+00 : f32
    %17 = vector.broadcast %cst_13 : f32 to vector<16x128xf32>
    %18 = arith.addf %17, %16 : vector<16x128xf32>
    %19 = arith.divf %17, %18 : vector<16x128xf32>
    %20 = vector.extract_strided_slice %6 {offsets = [0, 128], sizes = [16, 128], strides = [1, 1]} : vector<16x256xf32> to vector<16x128xf32>
    %21 = arith.mulf %20, %19 : vector<16x128xf32>
    %c0_14 = arith.constant 0 : index
    %c0_15 = arith.constant 0 : index
    %22 = vector.load %arg14[%c0_14, %c0_15] : memref<16x256xf32, #tpu.memory_space<vmem>>, vector<16x128xf32>
    tpu.vector_store %arg14[%c0_14, %c0_15], %21 {strides = array<i32>} : memref<16x256xf32, #tpu.memory_space<vmem>>, vector<16x128xf32>,
    %c0_16 = arith.constant 0 : index
    %c128 = arith.constant 128 : index
    %23 = vector.load %arg14[%c0_16, %c128] : memref<16x256xf32, #tpu.memory_space<vmem>>, vector<16x128xf32>
    tpu.vector_store %arg14[%c0_16, %c128], %19 {strides = array<i32>} : memref<16x256xf32, #tpu.memory_space<vmem>>, vector<16x128xf32>,
    %c0_17 = arith.constant 0 : index
    %c0_18 = arith.constant 0 : index
    %24 = vector.load %arg13[%c0_17, %c0_18] : memref<32x256xf32, #tpu.memory_space<vmem>>, vector<32x256xf32>
    %25 = vector.extract_strided_slice %4 {offsets = [0, 0], sizes = [16, 32], strides = [1, 1]} : vector<16x64xf32> to vector<16x32xf32>
    %c0_19 = arith.constant 0 : index
    %c0_20 = arith.constant 0 : index
    %26 = vector.load %arg14[%c0_19, %c0_20] : memref<16x256xf32, #tpu.memory_space<vmem>>, vector<16x256xf32>
    %cst_21 = arith.constant dense<0.000000e+00> : vector<32x256xf32>
    %27 = tpu.matmul %25, %26, %cst_21 {dimension_numbers = #tpu.dot_dimension_numbers<[0], [0], [1], [1], [0, 1, 1, 1], [], []>} : vector<16x32xf32>, vector<16x256xf32>, vector<32x256xf32> -> vector<32x256xf32>
    %28 = arith.addf %24, %27 : vector<32x256xf32>
    %c0_22 = arith.constant 0 : index
    %c0_23 = arith.constant 0 : index
    %29 = vector.load %arg13[%c0_22, %c0_23] : memref<32x256xf32, #tpu.memory_space<vmem>>, vector<32x256xf32>
    tpu.vector_store %arg13[%c0_22, %c0_23], %28 {strides = array<i32>} : memref<32x256xf32, #tpu.memory_space<vmem>>, vector<32x256xf32>,
    %c0_24 = arith.constant 0 : index
    %c0_25 = arith.constant 0 : index
    %30 = vector.load %arg2[%c0_24, %c0_25] : memref<16x128xf32, #tpu.memory_space<vmem>>, vector<16x128xf32>
    %31 = vector.extract_strided_slice %0 {offsets = [2, 0], sizes = [1, 128], strides = [1, 1]} : vector<4x128xf32> to vector<1x128xf32>
    %32 = vector.extract_strided_slice %0 {offsets = [3, 0], sizes = [1, 128], strides = [1, 1]} : vector<4x128xf32> to vector<1x128xf32>
    %cst_26 = arith.constant dense<0.000000e+00> : vector<16xf32>
    %33 = vector.multi_reduction <add>, %14, %cst_26 [1] : vector<16x128xf32> to vector<16xf32>
    %34 = vector.shape_cast %33 : vector<16xf32> to vector<16x1xf32>
    %cst_27 = arith.constant 3.125000e-02 : f32
    %35 = vector.broadcast %cst_27 : f32 to vector<16x1xf32>
    %36 = arith.mulf %34, %35 : vector<16x1xf32>
    %37 = arith.mulf %14, %14 : vector<16x128xf32>
    %cst_28 = arith.constant dense<0.000000e+00> : vector<16xf32>
    %38 = vector.multi_reduction <add>, %37, %cst_28 [1] : vector<16x128xf32> to vector<16xf32>
    %39 = vector.shape_cast %38 : vector<16xf32> to vector<16x1xf32>
    %cst_29 = arith.constant 3.125000e-02 : f32
    %40 = vector.broadcast %cst_29 : f32 to vector<16x1xf32>
    %41 = arith.mulf %39, %40 : vector<16x1xf32>
    %42 = arith.mulf %36, %36 : vector<16x1xf32>
    %43 = arith.subf %41, %42 : vector<16x1xf32>
    %cst_30 = arith.constant 0.000000e+00 : f32
    %44 = vector.broadcast %cst_30 : f32 to vector<16x1xf32>
    %45 = arith.maximumf %43, %44 : vector<16x1xf32>
    %46 = vector.broadcast %36 : vector<16x1xf32> to vector<16x128xf32>
    %47 = arith.subf %14, %46 : vector<16x128xf32>
    %cst_31 = arith.constant 9.99999974E-6 : f32
    %48 = vector.broadcast %cst_31 : f32 to vector<16x1xf32>
    %49 = arith.addf %45, %48 : vector<16x1xf32>
    %50 = math.rsqrt %49 : vector<16x1xf32>
    %51 = vector.broadcast %50 : vector<16x1xf32> to vector<16x128xf32>
    %52 = arith.mulf %47, %51 : vector<16x128xf32>
    %53 = vector.broadcast %31 : vector<1x128xf32> to vector<16x128xf32>
    %54 = arith.mulf %52, %53 : vector<16x128xf32>
    %55 = vector.broadcast %32 : vector<1x128xf32> to vector<16x128xf32>
    %56 = arith.addf %54, %55 : vector<16x128xf32>
    %57 = arith.negf %56 : vector<16x128xf32>
    %58 = math.exp %57 : vector<16x128xf32>
    %cst_32 = arith.constant 1.000000e+00 : f32
    %59 = vector.broadcast %cst_32 : f32 to vector<16x128xf32>
    %60 = arith.addf %59, %58 : vector<16x128xf32>
    %61 = arith.divf %59, %60 : vector<16x128xf32>
    %62 = arith.mulf %56, %61 : vector<16x128xf32>
    %63 = arith.addf %30, %62 : vector<16x128xf32>
    %c0_33 = arith.constant 0 : index
    %c0_34 = arith.constant 0 : index
    %64 = vector.load %arg10[%c0_33, %c0_34] : memref<16x128xf32, #tpu.memory_space<vmem>>, vector<16x128xf32>
    tpu.vector_store %arg10[%c0_33, %c0_34], %63 {strides = array<i32>} : memref<16x128xf32, #tpu.memory_space<vmem>>, vector<16x128xf32>,
    %c2_i32 = arith.constant 2 : i32
    %65 = arith.cmpi eq, %arg0, %c2_i32 : i32
    %66 = arith.extui %65 : i1 to i32
    %c0_i32_35 = arith.constant 0 : i32
    %67 = arith.cmpi ne, %66, %c0_i32_35 : i32
    scf.if %67 {
      %c0_36 = arith.constant 0 : index
      %c0_37 = arith.constant 0 : index
      %68 = vector.load %arg13[%c0_36, %c0_37] : memref<32x256xf32, #tpu.memory_space<vmem>>, vector<32x128xf32>
      %c0_38 = arith.constant 0 : index
      %c128_39 = arith.constant 128 : index
      %69 = vector.load %arg13[%c0_38, %c128_39] : memref<32x256xf32, #tpu.memory_space<vmem>>, vector<32x128xf32>
      %cst_40 = arith.constant 9.99999997E-7 : f32
      %70 = vector.broadcast %cst_40 : f32 to vector<32x128xf32>
      %71 = arith.addf %69, %70 : vector<32x128xf32>
      %72 = arith.divf %68, %71 : vector<32x128xf32>
      %c0_41 = arith.constant 0 : index
      %c384 = arith.constant 384 : index
      %73 = vector.load %arg11[%c0_41, %c384] : memref<32x512xf32, #tpu.memory_space<vmem>>, vector<32x128xf32>
      %74 = arith.addf %73, %72 : vector<32x128xf32>
      %c0_42 = arith.constant 0 : index
      %c0_43 = arith.constant 0 : index
      %75 = vector.load %arg1[%c0_42, %c0_43] : memref<32x128xf32, #tpu.memory_space<vmem>>, vector<32x128xf32>
      %76 = vector.extract_strided_slice %0 {offsets = [0, 0], sizes = [1, 128], strides = [1, 1]} : vector<4x128xf32> to vector<1x128xf32>
      %77 = vector.extract_strided_slice %0 {offsets = [1, 0], sizes = [1, 128], strides = [1, 1]} : vector<4x128xf32> to vector<1x128xf32>
      %cst_44 = arith.constant dense<0.000000e+00> : vector<32xf32>
      %78 = vector.multi_reduction <add>, %74, %cst_44 [1] : vector<32x128xf32> to vector<32xf32>
      %79 = vector.shape_cast %78 : vector<32xf32> to vector<32x1xf32>
      %cst_45 = arith.constant 3.125000e-02 : f32
      %80 = vector.broadcast %cst_45 : f32 to vector<32x1xf32>
      %81 = arith.mulf %79, %80 : vector<32x1xf32>
      %82 = arith.mulf %74, %74 : vector<32x128xf32>
      %cst_46 = arith.constant dense<0.000000e+00> : vector<32xf32>
      %83 = vector.multi_reduction <add>, %82, %cst_46 [1] : vector<32x128xf32> to vector<32xf32>
      %84 = vector.shape_cast %83 : vector<32xf32> to vector<32x1xf32>
      %cst_47 = arith.constant 3.125000e-02 : f32
      %85 = vector.broadcast %cst_47 : f32 to vector<32x1xf32>
      %86 = arith.mulf %84, %85 : vector<32x1xf32>
      %87 = arith.mulf %81, %81 : vector<32x1xf32>
      %88 = arith.subf %86, %87 : vector<32x1xf32>
      %cst_48 = arith.constant 0.000000e+00 : f32
      %89 = vector.broadcast %cst_48 : f32 to vector<32x1xf32>
      %90 = arith.maximumf %88, %89 : vector<32x1xf32>
      %91 = vector.broadcast %81 : vector<32x1xf32> to vector<32x128xf32>
      %92 = arith.subf %74, %91 : vector<32x128xf32>
      %cst_49 = arith.constant 9.99999974E-6 : f32
      %93 = vector.broadcast %cst_49 : f32 to vector<32x1xf32>
      %94 = arith.addf %90, %93 : vector<32x1xf32>
      %95 = math.rsqrt %94 : vector<32x1xf32>
      %96 = vector.broadcast %95 : vector<32x1xf32> to vector<32x128xf32>
      %97 = arith.mulf %92, %96 : vector<32x128xf32>
      %98 = vector.broadcast %76 : vector<1x128xf32> to vector<32x128xf32>
      %99 = arith.mulf %97, %98 : vector<32x128xf32>
      %100 = vector.broadcast %77 : vector<1x128xf32> to vector<32x128xf32>
      %101 = arith.addf %99, %100 : vector<32x128xf32>
      %102 = arith.negf %101 : vector<32x128xf32>
      %103 = math.exp %102 : vector<32x128xf32>
      %cst_50 = arith.constant 1.000000e+00 : f32
      %104 = vector.broadcast %cst_50 : f32 to vector<32x128xf32>
      %105 = arith.addf %104, %103 : vector<32x128xf32>
      %106 = arith.divf %104, %105 : vector<32x128xf32>
      %107 = arith.mulf %101, %106 : vector<32x128xf32>
      %108 = arith.addf %75, %107 : vector<32x128xf32>
      %c0_51 = arith.constant 0 : index
      %c0_52 = arith.constant 0 : index
      %109 = vector.load %arg9[%c0_51, %c0_52] : memref<32x128xf32, #tpu.memory_space<vmem>>, vector<32x128xf32>
      tpu.vector_store %arg9[%c0_51, %c0_52], %108 {strides = array<i32>} : memref<32x128xf32, #tpu.memory_space<vmem>>, vector<32x128xf32>,
    } else {
    }
    return
  }
  func.func @transform_0(%arg0: i32) -> (i32, i32) {
    %c0_i32 = arith.constant 0 : i32
    %c0_i32_0 = arith.constant 0 : i32
    %c0_i32_1 = arith.constant 0 : i32
    return %c0_i32, %c0_i32_0 : i32, i32
  }
  func.func @transform_1(%arg0: i32) -> (i32, i32) {
    %c0_i32 = arith.constant 0 : i32
    %c0_i32_0 = arith.constant 0 : i32
    return %arg0, %c0_i32 : i32, i32
  }
  func.func @transform_2(%arg0: i32) -> (i32, i32) {
    %c0_i32 = arith.constant 0 : i32
    %c0_i32_0 = arith.constant 0 : i32
    return %arg0, %c0_i32 : i32, i32
  }
  func.func @transform_3(%arg0: i32) -> (i32, i32) {
    %c0_i32 = arith.constant 0 : i32
    %c0_i32_0 = arith.constant 0 : i32
    %c0_i32_1 = arith.constant 0 : i32
    return %c0_i32, %c0_i32_0 : i32, i32
  }
  func.func @transform_4(%arg0: i32) -> (i32, i32) {
    %c0_i32 = arith.constant 0 : i32
    %c0_i32_0 = arith.constant 0 : i32
    %c0_i32_1 = arith.constant 0 : i32
    return %c0_i32, %c0_i32_0 : i32, i32
  }
  func.func @transform_5(%arg0: i32) -> (i32, i32) {
    %c0_i32 = arith.constant 0 : i32
    %c0_i32_0 = arith.constant 0 : i32
    %c0_i32_1 = arith.constant 0 : i32
    return %c0_i32, %c0_i32_0 : i32, i32
  }
  func.func @transform_6(%arg0: i32) -> (i32, i32) {
    %c0_i32 = arith.constant 0 : i32
    %c0_i32_0 = arith.constant 0 : i32
    %c0_i32_1 = arith.constant 0 : i32
    return %c0_i32, %c0_i32_0 : i32, i32
  }
  func.func @transform_7(%arg0: i32) -> (i32, i32) {
    %c0_i32 = arith.constant 0 : i32
    %c0_i32_0 = arith.constant 0 : i32
    %c0_i32_1 = arith.constant 0 : i32
    return %c0_i32, %c0_i32_0 : i32, i32
  }
  func.func @transform_8(%arg0: i32) -> (i32, i32) {
    %c0_i32 = arith.constant 0 : i32
    %c0_i32_0 = arith.constant 0 : i32
    %c0_i32_1 = arith.constant 0 : i32
    return %c0_i32, %c0_i32_0 : i32, i32
  }
  func.func @transform_9(%arg0: i32) -> (i32, i32) {
    %c0_i32 = arith.constant 0 : i32
    %c0_i32_0 = arith.constant 0 : i32
    return %arg0, %c0_i32 : i32, i32
  }
}

</mosaic_0001>

<bundles_post_ra>
// kernel: alignn_layer.3
= control target key start
LH: loop header
LB: loop body
LE: loop exit
PB: predicated region body
PF: predicated region fallthrough
CT: control target
= control target key end

     0   :  { %s1980_s0 = inlined_call_operand.vmem [shape: f32[16,128], index: 0, kind: input, shape index: {}]   ;;  %s1981_s1 = inlined_call_operand.vmem [shape: f32[32,128], index: 1, kind: input, shape index: {}]   ;;  %s1982_s2 = inlined_call_operand.vmem [shape: f32[32,32], index: 2, kind: input, shape index: {}]   ;;  %s1983_s3 = inlined_call_operand.vmem [shape: f32[128,512], index: 3, kind: input, shape index: {}]   ;;  %s1984_s4 = inlined_call_operand.vmem [shape: f32[1,512], index: 4, kind: input, shape index: {}]   ;;  %s1985_s5 = inlined_call_operand.vmem [shape: f32[128,128], index: 5, kind: input, shape index: {}]   ;;  %s1986_s6 = inlined_call_operand.vmem [shape: f32[1,128], index: 6, kind: input, shape index: {}]   ;;  %s1987_s7 = inlined_call_operand.vmem [shape: f32[4,128], index: 7, kind: input, shape index: {}]   ;;  %s1988_s8 = inlined_call_operand.hbm [shape: f32[16,128], index: 8, kind: output, shape index: {0}]   ;;  %s1989_s9 = inlined_call_operand.hbm [shape: f32[32,128], index: 9, kind: output, shape index: {1}]  }
   0x1   :  { %1991 = sst [smem:[#allocation13_spill]] %s1980_s0 }
   0x2   :  { %15 = vsyncpa [#allocation7], 0 }
   0x3   :  { %16 = vsyncpa [#allocation9], 0 }
   0x4   :  { %18 = vsyncpa [#allocation9 + $0x1], 0  ;;  %s1537_s30 = smov 0   ;;  %s1539_s10 = smov 0  }
   0x5   :  { %s1541_s11 = smov 0   ;;  %s1543_s12 = smov 0  }
   0x6 LB: > { %s1558_s13 = sadd.s32 4294967295, %s1479_s12   ;;  %s1222_s14 = sadd.s32 4294967294, %s1479_s12   ;;  %s1479_s12 = sphi %s1543_s12, %s2002_s12   ;;  %s1475_s11 = sphi %s1541_s11, %s2001_s11   ;;  %s1471_s10 = sphi %s1539_s10, %s2000_s10   ;;  %s1467_s30 = sphi %s1537_s30, %s1999_s30  }
   0x7   : > { %s1562_s15 = sadd.s32 1, %s1479_s12   ;;  %s230_s16 = sadd.s32 1, %s1475_s11 }
   0x8   : > { %s227_s17 = ssub.s32 %s1479_s12, %s1562_s15  ;;  %p240_p0 = scmp.ne.s32.totalorder %s1475_s11, %s1471_s10 }
   0x9   : > { %p228_p1 = scmp.eq.s32.totalorder %s227_s17, 0  ;;  %p241_p2 = scmp.eq.s32.totalorder %s1558_s13, 1 }
   0xa   : > { %p246_p3 = scmp.ne.s32.totalorder %s1471_s10, %s1467_s30  ;;  %p247_p4 = scmp.eq.s32.totalorder %s1222_s14, 1 }
   0xb   : > { %s1573_s18 = scalar_select %p228_p1, %s1475_s11, %s230_s16  }
   0xc   : > { %p1577_p5 = por %p241_p2, %p240_p0  ;;  %p1581_p6 = por %p247_p4, %p246_p3 }
   0xd   : > { %1992 = sst [smem:[#allocation12_spill]] %s1573_s18  ;;  %p1225_p7 = scmp.ge.s32.totalorder %s1479_s12, 1 }
   0xe   : > { %p301_p8 = scmp.lt.s32.totalorder %s1479_s12, 3 }
  0x10   : > { %p302_p9 = pnand %p1225_p7, %p301_p8 }
  0x11   : > { %s1990_s21 = sand.u32 (!%p302_p9), 1, %s1471_s10   ;;  %s1227_s22 = sshll.u32 (!%p302_p9), %s1558_s13, 1 }
  0x12   : > { %305 = sbr.rel (%p302_p9) target bundleno = 1005 (0x3ed), region = 52  ;;  %s1226_s25 = sshll.u32 (!%p302_p9), %s1990_s21, 4 }
  0x13   : > { %p343_p10 = scmp.lt.s32.totalorder (!%p302_p9), %s1227_s22, 3  ;;  %s1606_s18 = scalar_lea.vmem (!%p302_p9), [#allocation8], %s1226_s25 }
  0x14   : > { %p1231_p11 = scmp.ne.s32.totalorder (!%p302_p9), %s1558_s13, 0 }
  0x17   : > { %v1592_v0 = vld [vmem:[%s1987_s7] sm:$0xf]  ;;  %s2004_s22 = smov (!%p343_p10, %s1227_s22), 3  ;;  %359 = sbr.rel (%p1231_p11) target bundleno = 264 (0x108), region = 56 }
  0x18   : > { %s1228_s26 = sshll.u32 %s2004_s22, 3  ;;  %s1995_s0 = sld [smem:[#allocation13_spill]] (!%p1231_p11) }
  0x19   : > { %s1599_s29 = scalar_lea.vmem %s1981_s1, %s1228_s26  ;;  %s1604_s17 = scalar_lea.vmem %s1982_s2, %s1228_s26 }
  0x1c   : > { %v423_v1 = vld [vmem:[%s1983_s3 + $0x1e8] sm:$0xff]  ;;  %v425_v2 = vld [vmem:[%s1983_s3 + $0x1f8] sm:$0xff]  ;;  %v422_v3 = vld [vmem:[%s1983_s3 + $0x1e0] sm:$0xff]  ;;  %v1481_v7 = vmov 0.0  }
  0x1d   : > { %448 = vmatprep.subr.mxu0 %v423_v1  ;;  %525 = vmatprep.subr.mxu1 %v425_v2  ;;  %v424_v4 = vld [vmem:[%s1983_s3 + $0x1f0] sm:$0xff]  ;;  %v419_v5 = vld [vmem:[%s1983_s3 + $0x1c8] sm:$0xff]  ;;  %v421_v6 = vld [vmem:[%s1983_s3 + $0x1d8] sm:$0xff]  ;;  %612 = vst [vmem:[#allocation3 + $0x8] sm:$0xff] %v1481_v7 }
  0x1e   : > { %613 = vst [vmem:[#allocation3 + $0x20] sm:$0xff] %v1481_v7  ;;  %618 = vst [vmem:[#allocation4 + $0x8] sm:$0xff] %v1481_v7  ;;  %449 = vmatpush1.msra.mxu0 %v422_v3  ;;  %526 = vmatpush1.msra.mxu1 %v424_v4  ;;  %v418_v8 = vld [vmem:[%s1983_s3 + $0x1c0] sm:$0xff]  ;;  %v420_v9 = vld [vmem:[%s1983_s3 + $0x1d0] sm:$0xff] }
  0x1f   : > { %619 = vst [vmem:[#allocation4 + $0x10] sm:$0xff] %v1481_v7  ;;  %620 = vst [vmem:[#allocation4] sm:$0xff] %v1481_v7  ;;  %v415_v10 = vld [vmem:[%s1983_s3 + $0x1a8] sm:$0xff]  ;;  %450 = vmatprep.subr.mxu0 %v419_v5  ;;  %527 = vmatprep.subr.mxu1 %v421_v6  ;;  %v417_v11 = vld [vmem:[%s1983_s3 + $0x1b8] sm:$0xff]  ;;  %v428_v5 = vlaneseq }
  0x20   : > { %621 = vst [vmem:[#allocation4 + $0x18] sm:$0xff] %v1481_v7  ;;  %v414_v12 = vld [vmem:[%s1983_s3 + $0x1a0] sm:$0xff]  ;;  %v416_v13 = vld [vmem:[%s1983_s3 + $0x1b0] sm:$0xff]  ;;  %451 = vmatpush1.msra.mxu0 %v418_v8  ;;  %528 = vmatpush1.msra.mxu1 %v420_v9  ;;  %v411_v14 = vld [vmem:[%s1983_s3 + $0x188] sm:$0xff] }
  0x21   : > { %v413_v15 = vld [vmem:[%s1983_s3 + $0x198] sm:$0xff]  ;;  %452 = vmatprep.subr.mxu0 %v415_v10  ;;  %529 = vmatprep.subr.mxu1 %v417_v11  ;;  %v410_v16 = vld [vmem:[%s1983_s3 + $0x180] sm:$0xff]  ;;  %v412_v17 = vld [vmem:[%s1983_s3 + $0x190] sm:$0xff]  ;;  %v429_v6 = vshrl.u32 %v428_v5, 7 }
  0x22   : > { %453 = vmatpush1.msra.mxu0 %v414_v12  ;;  %530 = vmatpush1.msra.mxu1 %v416_v13  ;;  %v407_v18 = vld [vmem:[%s1983_s3 + $0x168] sm:$0xff]  ;;  %v409_v19 = vld [vmem:[%s1983_s3 + $0x178] sm:$0xff]  ;;  %v406_v20 = vld [vmem:[%s1983_s3 + $0x160] sm:$0xff] }
  0x23   : > { %454 = vmatprep.subr.mxu0 %v411_v14  ;;  %531 = vmatprep.subr.mxu1 %v413_v15  ;;  %v408_v21 = vld [vmem:[%s1983_s3 + $0x170] sm:$0xff]  ;;  %v403_v22 = vld [vmem:[%s1983_s3 + $0x148] sm:$0xff]  ;;  %v405_v23 = vld [vmem:[%s1983_s3 + $0x158] sm:$0xff]  ;;  %v430_v8 = vsub.s32 0, %v429_v6  ;;  %v438_v9 = vsub.s32 2, %v429_v6  ;;  %v434_v11 = vsub.s32 1, %v429_v6 }
  0x24   : > { %455 = vmatpush1.msra.mxu0 %v410_v16  ;;  %532 = vmatpush1.msra.mxu1 %v412_v17  ;;  %v402_v24 = vld [vmem:[%s1983_s3 + $0x140] sm:$0xff]  ;;  %v404_v25 = vld [vmem:[%s1983_s3 + $0x150] sm:$0xff]  ;;  %v399_v26 = vld [vmem:[%s1983_s3 + $0x128] sm:$0xff]  ;;  %v442_v12 = vsub.s32 3, %v429_v6 }
  0x25   : > { %456 = vmatprep.subr.mxu0 %v407_v18  ;;  %533 = vmatprep.subr.mxu1 %v409_v19  ;;  %v401_v27 = vld [vmem:[%s1983_s3 + $0x138] sm:$0xff]  ;;  %v398_v28 = vld [vmem:[%s1983_s3 + $0x120] sm:$0xff]  ;;  %v400_v29 = vld [vmem:[%s1983_s3 + $0x130] sm:$0xff] }
  0x26   : > { %457 = vmatpush1.msra.mxu0 %v406_v20  ;;  %534 = vmatpush1.msra.mxu1 %v408_v21  ;;  %v395_v30 = vld [vmem:[%s1983_s3 + $0x108] sm:$0xff]  ;;  %v397_v31 = vld [vmem:[%s1983_s3 + $0x118] sm:$0xff]  ;;  %v394_v32 = vld [vmem:[%s1983_s3 + $0x100] sm:$0xff] }
  0x27   : > { %458 = vmatprep.subr.mxu0 %v403_v22  ;;  %535 = vmatprep.subr.mxu1 %v405_v23  ;;  %v396_v33 = vld [vmem:[%s1983_s3 + $0x110] sm:$0xff]  ;;  %v391_v34 = vld [vmem:[%s1983_s3 + $0xe8] sm:$0xff]  ;;  %v393_v35 = vld [vmem:[%s1983_s3 + $0xf8] sm:$0xff] }
  0x28   : > { %459 = vmatpush1.msra.mxu0 %v402_v24  ;;  %536 = vmatpush1.msra.mxu1 %v404_v25  ;;  %v390_v36 = vld [vmem:[%s1983_s3 + $0xe0] sm:$0xff]  ;;  %v392_v37 = vld [vmem:[%s1983_s3 + $0xf0] sm:$0xff]  ;;  %v387_v38 = vld [vmem:[%s1983_s3 + $0xc8] sm:$0xff] }
  0x29   : > { %460 = vmatprep.subr.mxu0 %v399_v26  ;;  %537 = vmatprep.subr.mxu1 %v401_v27  ;;  %v389_v39 = vld [vmem:[%s1983_s3 + $0xd8] sm:$0xff]  ;;  %v386_v40 = vld [vmem:[%s1983_s3 + $0xc0] sm:$0xff]  ;;  %v388_v41 = vld [vmem:[%s1983_s3 + $0xd0] sm:$0xff] }
  0x2a   : > { %461 = vmatpush1.msra.mxu0 %v398_v28  ;;  %538 = vmatpush1.msra.mxu1 %v400_v29  ;;  %v383_v42 = vld [vmem:[%s1983_s3 + $0xa8] sm:$0xff]  ;;  %v385_v43 = vld [vmem:[%s1983_s3 + $0xb8] sm:$0xff]  ;;  %v382_v44 = vld [vmem:[%s1983_s3 + $0xa0] sm:$0xff] }
  0x2b   : > { %462 = vmatprep.subr.mxu0 %v395_v30  ;;  %539 = vmatprep.subr.mxu1 %v397_v31  ;;  %v384_v45 = vld [vmem:[%s1983_s3 + $0xb0] sm:$0xff]  ;;  %v379_v46 = vld [vmem:[%s1983_s3 + $0x88] sm:$0xff]  ;;  %v381_v47 = vld [vmem:[%s1983_s3 + $0x98] sm:$0xff] }
  0x2c   : > { %463 = vmatpush1.msra.mxu0 %v394_v32  ;;  %540 = vmatpush1.msra.mxu1 %v396_v33  ;;  %v378_v48 = vld [vmem:[%s1983_s3 + $0x80] sm:$0xff]  ;;  %v380_v49 = vld [vmem:[%s1983_s3 + $0x90] sm:$0xff]  ;;  %v375_v50 = vld [vmem:[%s1983_s3 + $0x68] sm:$0xff] }
  0x2d   : > { %464 = vmatprep.subr.mxu0 %v391_v34  ;;  %541 = vmatprep.subr.mxu1 %v393_v35  ;;  %v377_v51 = vld [vmem:[%s1983_s3 + $0x78] sm:$0xff]  ;;  %v374_v52 = vld [vmem:[%s1983_s3 + $0x60] sm:$0xff]  ;;  %v376_v53 = vld [vmem:[%s1983_s3 + $0x70] sm:$0xff] }
  0x2e   : > { %465 = vmatpush1.msra.mxu0 %v390_v36  ;;  %542 = vmatpush1.msra.mxu1 %v392_v37  ;;  %v371_v54 = vld [vmem:[%s1983_s3 + $0x48] sm:$0xff]  ;;  %v373_v55 = vld [vmem:[%s1983_s3 + $0x58] sm:$0xff]  ;;  %v370_v56 = vld [vmem:[%s1983_s3 + $0x40] sm:$0xff] }
  0x2f   : > { %466 = vmatprep.subr.mxu0 %v387_v38  ;;  %543 = vmatprep.subr.mxu1 %v389_v39  ;;  %v372_v57 = vld [vmem:[%s1983_s3 + $0x50] sm:$0xff]  ;;  %v367_v58 = vld [vmem:[%s1983_s3 + $0x28] sm:$0xff]  ;;  %v369_v59 = vld [vmem:[%s1983_s3 + $0x38] sm:$0xff] }
  0x30   : > { %467 = vmatpush1.msra.mxu0 %v386_v40  ;;  %544 = vmatpush1.msra.mxu1 %v388_v41  ;;  %v366_v60 = vld [vmem:[%s1983_s3 + $0x20] sm:$0xff]  ;;  %v368_v61 = vld [vmem:[%s1983_s3 + $0x30] sm:$0xff]  ;;  %v363_v62 = vld [vmem:[%s1983_s3 + $0x8] sm:$0xff] }
  0x31   : > { %468 = vmatprep.subr.mxu0 %v383_v42  ;;  %545 = vmatprep.subr.mxu1 %v385_v43  ;;  %v365_v63 = vld [vmem:[%s1983_s3 + $0x18] sm:$0xff]  ;;  %v362_v1 = vld [vmem:[%s1983_s3] sm:$0xff]  ;;  %v364_v2 = vld [vmem:[%s1983_s3 + $0x10] sm:$0xff] }
  0x32   : > { %469 = vmatpush1.msra.mxu0 %v382_v44  ;;  %546 = vmatpush1.msra.mxu1 %v384_v45  ;;  %v360_v3 = vld [vmem:[%s1995_s0] sm:$0xff]  ;;  %v361_v4 = vld [vmem:[%s1995_s0 + $0x8] sm:$0xff] }
  0x33   : > { %470 = vmatprep.subr.mxu0 %v379_v46  ;;  %547 = vmatprep.subr.mxu1 %v381_v47  ;;  %v426_v10 = vld [vmem:[%s1984_s4] sm:$0xf] }
  0x34   : > { %471 = vmatpush1.msra.mxu0 %v378_v48  ;;  %548 = vmatpush1.msra.mxu1 %v380_v49  ;;  %v431_v13 = vrot.slane %v426_v10, %v430_v8  ;;  %v439_v14 = vrot.slane %v426_v10, %v438_v9  ;;  %v435_v15 = vrot.slane %v426_v10, %v434_v11 }
  0x35   : > { %472 = vmatprep.subr.mxu0 %v375_v50  ;;  %549 = vmatprep.subr.mxu1 %v377_v51 }
  0x36   : > { %473 = vmatpush1.msra.mxu0 %v374_v52  ;;  %550 = vmatpush1.msra.mxu1 %v376_v53 }
  0x37   : > { %474 = vmatprep.subr.mxu0 %v371_v54  ;;  %551 = vmatprep.subr.mxu1 %v373_v55 }
  0x38   : > { %475 = vmatpush1.msra.mxu0 %v370_v56  ;;  %552 = vmatpush1.msra.mxu1 %v372_v57 }
  0x39   : > { %476 = vmatprep.subr.mxu0 %v367_v58  ;;  %553 = vmatprep.subr.mxu1 %v369_v59 }
  0x3a   : > { %477 = vmatpush1.msra.mxu0 %v366_v60  ;;  %554 = vmatpush1.msra.mxu1 %v368_v61 }
  0x3b   : > { %478 = vmatprep.subr.mxu0 %v363_v62  ;;  %555 = vmatprep.subr.mxu1 %v365_v63 }
  0x3c   : > { %479 = vmatpush1.msra.mxu0 %v362_v1  ;;  %512 = vmatprep.mubr.f32.mxu0 %v1481_v7 }
  0x3d   : > { %556 = vmatpush1.msra.mxu1 %v364_v2  ;;  %589 = vmatprep.mubr.f32.mxu1 %v1481_v7 }
  0x3e   : > { %513 = vmatmul.mubr.f32.vlgmr.msra.gmra.mxu0 %v360_v3  ;;  %590 = vmatmul.mubr.f32.vlgmr.msra.gmra.mxu1 %v360_v3 }
  0x3f   : > { %518 = vmatprep.mubr.f32.mxu0 %v1481_v7  ;;  %595 = vmatprep.mubr.f32.mxu1 %v1481_v7  ;;  %v443_v7 = vrot.slane %v426_v10, %v442_v12 }
  0x42   : > { %519 = vmatmul.mubr.f32.gmra.mxu0 %v361_v4  ;;  %596 = vmatmul.mubr.f32.gmra.mxu1 %v361_v4 }
  0xfe   : > { %v514_v16 = vpop.f32.mrf.mxu0  ;;  %v591_v17 = vpop.f32.mrf.mxu1 }
  0xff   : > { %v515_v18 = vadd.f32 %v514_v16, %v431_v13  ;;  %v592_v19 = vadd.f32 %v591_v17, %v439_v14 }
 0x100   : > { %v516_v20 = vpop.f32.mrf.mxu0  ;;  %v593_v21 = vpop.f32.mrf.mxu1 }
 0x101   : > { %614 = vst [vmem:[#allocation3 + $0x28] sm:$0xff] %v515_v18  ;;  %610 = vst [vmem:[#allocation3] sm:$0xff] %v592_v19  ;;  %v517_v22 = vadd.f32 %v516_v20, %v435_v15  ;;  %v594_v23 = vadd.f32 %v593_v21, %v443_v7 }
 0x102   : > { %v520_v24 = vpop.f32.mrf.mxu0  ;;  %v597_v25 = vpop.f32.mrf.mxu1 }
 0x103   : > { %615 = vst [vmem:[#allocation3 + $0x10] sm:$0xff] %v517_v22  ;;  %605 = vst [vmem:[#allocation2 + $0x10] sm:$0xff] %v594_v23  ;;  %v521_v26 = vadd.f32 %v520_v24, %v431_v13  ;;  %v598_v27 = vadd.f32 %v597_v25, %v439_v14 }
 0x104   : > { %v522_v28 = vpop.f32.mrf.mxu0  ;;  %v599_v29 = vpop.f32.mrf.mxu1 }
 0x105   : > { %616 = vst [vmem:[#allocation3 + $0x30] sm:$0xff] %v521_v26  ;;  %611 = vst [vmem:[#allocation3 + $0x18] sm:$0xff] %v598_v27  ;;  %v523_v30 = vadd.f32 %v522_v28, %v435_v15  ;;  %v600_v31 = vadd.f32 %v599_v29, %v443_v7 }
 0x107   : > { %617 = vst [vmem:[#allocation3 + $0x38] sm:$0xff] %v523_v30  ;;  %609 = vst [vmem:[#allocation2 + $0x38] sm:$0xff] %v600_v31 }
 0x108 PF: > { %v733_v32 = vld [vmem:[%s1985_s5 + $0x78] sm:$0xff]  ;;  %v732_v33 = vld [vmem:[%s1985_s5 + $0x70] sm:$0xff]  ;;  %v1482_v34 = vmov 0.0   ;;  %v731_v35 = vld [vmem:[%s1985_s5 + $0x68] sm:$0xff]  ;;  %vm632_vm0 = vcmask 261120   ;;  %vm878_vm1 = vcmask 130048  }
 0x109   : > { %1270 = vmatprep.subr.mxu1 %v733_v32  ;;  %703 = vmatprep.mubr.f32.mxu0 %v1482_v34  ;;  %v730_v38 = vld [vmem:[%s1985_s5 + $0x60] sm:$0xff]  ;;  %v628_v40 = vld [vmem:[#allocation3 + $0x28] sm:$0xff]  ;;  %v729_v42 = vld [vmem:[%s1985_s5 + $0x58] sm:$0xff]  ;;  %p1241_p12 = scmp.ne.s32.totalorder %s1558_s13, 1 }
 0x10a   : > { %1271 = vmatpush3.msra.mxu1 %v733_v32  ;;  %v629_v39 = vld [vmem:[#allocation3 + $0x10] sm:$0xff]  ;;  %v627_v41 = vld [vmem:[#allocation3 + $0x20] sm:$0xff]  ;;  %v625_v44 = vld [vmem:[#allocation3 + $0x8] sm:$0xff]  ;;  %s1996_s0 = sld [smem:[#allocation13_spill]] (!%p1241_p12) }
 0x10b   : > { %1272 = vmatprep.subr.mxu1 %v732_v33  ;;  %v728_v45 = vld [vmem:[%s1985_s5 + $0x50] sm:$0xff]  ;;  %v624_v46 = vld [vmem:[#allocation3] sm:$0xff]  ;;  %v727_v48 = vld [vmem:[%s1985_s5 + $0x48] sm:$0xff] }
 0x10c   : > { %v630_v37 = vld [vmem:[#allocation3 + $0x30] sm:$0xff]  ;;  %1273 = vmatpush3.msra.mxu1 %v732_v33  ;;  %v626_v43 = vld [vmem:[#allocation3 + $0x18] sm:$0xff]  ;;  %v622_v47 = vld [vmem:[%s1604_s17] sm:$0xff] }
 0x10d   : > { %1274 = vmatprep.subr.mxu1 %v731_v35  ;;  %v1844_v49 = vld [vmem:[%s1599_s29] sm:$0xff]  ;;  %v623_v51 = vld [vmem:[%s1604_s17 + $0x8] sm:$0xff]  ;;  %v725_v52 = vld [vmem:[%s1985_s5 + $0x38] sm:$0xff]  ;;  %846 = vxpose.xlu0.b32.start [1/2] (short) (narrow) %v622_v47, 16 }
 0x10e   : > { %v631_v36 = vld [vmem:[#allocation3 + $0x38] sm:$0xff]  ;;  %1275 = vmatpush3.msra.mxu1 %v731_v35  ;;  %v726_v50 = vld [vmem:[%s1985_s5 + $0x40] sm:$0xff]  ;;  %1302 = vmatprep.mubr.f32.mxu1 %v1844_v49  ;;  %v724_v53 = vld [vmem:[%s1985_s5 + $0x30] sm:$0xff] }
 0x10f   : > { %663 = vmatprep.subr.mxu0 %v631_v36  ;;  %1276 = vmatprep.subr.mxu1 %v730_v38  ;;  %v723_v54 = vld [vmem:[%s1985_s5 + $0x28] sm:$0xff]  ;;  %v722_v55 = vld [vmem:[%s1985_s5 + $0x20] sm:$0xff]  ;;  %v721_v56 = vld [vmem:[%s1985_s5 + $0x18] sm:$0xff] }
 0x110   : > { %664 = vmatpush1.msra.mxu0 %v630_v37  ;;  %1277 = vmatpush3.msra.mxu1 %v730_v38  ;;  %v720_v57 = vld [vmem:[%s1985_s5 + $0x10] sm:$0xff]  ;;  %v719_v58 = vld [vmem:[%s1985_s5 + $0x8] sm:$0xff]  ;;  %v718_v59 = vld [vmem:[%s1985_s5] sm:$0xff] }
 0x111   : > { %665 = vmatprep.subr.mxu0 %v629_v39  ;;  %1278 = vmatprep.subr.mxu1 %v729_v42  ;;  %v1880_v60 = vld [vmem:[%s1599_s29 + $0x8] sm:$0xff]  ;;  %v1234_v2 = vld [vmem:[%s1986_s6] ss:$0 sm:$0xff]  ;;  %v1000_v39 = vlaneseq }
 0x112   : > { %666 = vmatpush1.msra.mxu0 %v628_v40  ;;  %1279 = vmatpush3.msra.mxu1 %v729_v42 }
 0x113   : > { %667 = vmatprep.subr.mxu0 %v627_v41  ;;  %1280 = vmatprep.subr.mxu1 %v728_v45 }
 0x114   : > { %668 = vmatpush1.msra.mxu0 %v626_v43  ;;  %1281 = vmatpush3.msra.mxu1 %v728_v45 }
 0x115   : > { %669 = vmatprep.subr.mxu0 %v625_v44  ;;  %1282 = vmatprep.subr.mxu1 %v727_v48 }
 0x116   : > { %670 = vmatpush1.msra.mxu0 %v624_v46  ;;  %1283 = vmatpush3.msra.mxu1 %v727_v48 }
 0x117   : > { %1232 = vmatmul.mubr.msk.f32.vlgmr.msra.gmra.mxu0 %vm632_vm0, %v622_v47  ;;  %1284 = vmatprep.subr.mxu1 %v726_v50 }
 0x118   : > { %709 = vmatprep.mubr.f32.mxu0 %v1482_v34  ;;  %1285 = vmatpush3.msra.mxu1 %v726_v50 }
 0x119   : > { %1286 = vmatprep.subr.mxu1 %v725_v52  ;;  %847 = vxpose.xlu0.b32.end [2/2] (short) (narrow) %v623_v51, 16 }
 0x11a   : > { %1287 = vmatpush3.msra.mxu1 %v725_v52 }
 0x11b   : > { %1233 = vmatmul.mubr.msk.f32.gmra.mxu0 %vm632_vm0, %v623_v51  ;;  %1288 = vmatprep.subr.mxu1 %v724_v53 }
 0x11c   : > { %949 = vmatprep.mubr.f32.mxu0 %v1482_v34  ;;  %1289 = vmatpush3.msra.mxu1 %v724_v53 }
 0x11d   : > { %1290 = vmatprep.subr.mxu1 %v723_v54 }
 0x11e   : > { %1291 = vmatpush3.msra.mxu1 %v723_v54 }
 0x11f   : > { %1292 = vmatprep.subr.mxu1 %v722_v55 }
 0x120   : > { %1293 = vmatpush3.msra.mxu1 %v722_v55 }
 0x121   : > { %1294 = vmatprep.subr.mxu1 %v721_v56 }
 0x122   : > { %1295 = vmatpush3.msra.mxu1 %v721_v56 }
 0x123   : > { %1296 = vmatprep.subr.mxu1 %v720_v57 }
 0x124   : > { %1297 = vmatpush3.msra.mxu1 %v720_v57 }
 0x125   : > { %1298 = vmatprep.subr.mxu1 %v719_v58 }
 0x126   : > { %1299 = vmatpush3.msra.mxu1 %v719_v58 }
 0x127   : > { %1300 = vmatprep.subr.mxu1 %v718_v59 }
 0x128   : > { %1301 = vmatpush3.msra.mxu1 %v718_v59 }
 0x129   : > { %1303 = vmatmul.mubr.f32.vlgmr.msra.gmra.mxu1 %v1880_v60 }
 0x191   : > { %v862_v19 = vpop.trf.xlu0 }
 0x195   : > { %v863_v22 = vpop.trf.xlu0 }
 0x1d7   : > { %v705_v61 = vpop.f32.mrf.mxu0 }
 0x1d9   : > { %v707_v62 = vpop.f32.mrf.mxu0 }
 0x1db   : > { %v711_v63 = vpop.f32.mrf.mxu0 }
 0x1dd   : > { %v713_v17 = vpop.f32.mrf.mxu0 }
 0x1e9   : > { %v1304_v1 = vpop.f32.mrf.mxu1 }
 0x1ea   : > { %v810_v3 = vadd.f32 %v1304_v1, %v711_v63 }
 0x1eb   : > { %v800_v4 = vpop.f32.mrf.mxu1 }
 0x1ec   : > { %v1886_v5 = vadd.f32 %v1234_v2, %v810_v3  ;;  %v809_v6 = vadd.f32 %v800_v4, %v705_v61 }
 0x1ee   : > { %v1236_v8 = vmul.f32 -1.442695, %v1886_v5  ;;  %v818_v9 = vadd.f32 %v1234_v2, %v809_v6  ;;  %974 = vadd.xlane.f32.xlu1 %v1886_v5  ;;  %v979_v12 = vmul.f32 %v1886_v5, %v1886_v5  ;;  %v838_v6 = vld [vmem:[#allocation4 + $0x8] sm:$0xff] }
 0x1f0   : > { %1355 = vpow2.f32 %v1236_v8  ;;  %v1235_v10 = vmul.f32 -1.442695, %v818_v9  ;;  %v978_v11 = vmul.f32 %v818_v9, %v818_v9 }
 0x1f2   : > { %1357 = vpow2.f32 %v1235_v10  ;;  %980 = vadd.xlane.f32.xlu0 %v978_v11  ;;  %972 = vadd.xlane.f32.xlu1 %v818_v9 }
 0x1f6   : > { %982 = vadd.xlane.f32.xlu1 %v979_v12  ;;  %v840_v12 = vld [vmem:[#allocation4] sm:$0xff] }
 0x1fd   : > { %v1356_v13 = vpop.eup %1355 }
 0x1fe   : > { %v827_v14 = vadd.f32 1.0, %v1356_v13 }
 0x1ff   : > { %v1358_v15 = vpop.eup %1357 }
 0x200   : > { %1359 = vrcp.f32 %v827_v14  ;;  %v826_v7 = vadd.f32 1.0, %v1358_v15  ;;  %v841_v15 = vld [vmem:[#allocation4 + $0x18] sm:$0xff] }
 0x202   : > { %1361 = vrcp.f32 %v826_v7 }
 0x20d   : > { %v1360_v16 = vpop.eup %1359 }
 0x20e   : > { %913 = vmatprep.subr.mxu0 %v1360_v16  ;;  %v833_v18 = vmul.f32 %v1360_v16, %v713_v17 }
 0x20f   : > { %v1362_v20 = vpop.eup %1361 }
 0x210   : > { %914 = vmatpush1.msra.mxu0 %v833_v18  ;;  %v832_v21 = vmul.f32 %v1362_v20, %v707_v62 }
 0x211   : > { %915 = vmatprep.subr.mxu0 %v1362_v20 }
 0x212   : > { %916 = vmatpush1.msra.mxu0 %v832_v21 }
 0x213   : > { %1237 = vmatmul.mubr.msk.f32.vlgmr.msra.gmra.mxu0 %vm878_vm1, %v862_v19 }
 0x214   : > { %955 = vmatprep.mubr.f32.mxu0 %v1482_v34  ;;  %v1893_v34 = vshrl.u32 %v1000_v39, 7 }
 0x216   : > { %v1002_v41 = vsub.s32 2, %v1893_v34  ;;  %v1008_v42 = vsub.s32 3, %v1893_v34 }
 0x217   : > { %1238 = vmatmul.mubr.msk.f32.gmra.mxu0 %vm878_vm1, %v863_v22 }
 0x218   : > { %v1003_v43 = vrot.slane %v1592_v0, %v1002_v41  ;;  %v1009_v47 = vrot.slane %v1592_v0, %v1008_v42 }
 0x277   : > { %v975_v23 = vpop.xlane.xlu1 %974 }
 0x278   : > { %v977_v26 = vmul.f32 0.03125, %v975_v23 }
 0x27a   : > { %v987_v31 = vmul.f32 %v977_v26, %v977_v26  ;;  %v993_v46 = vsub.f32 %v1886_v5, %v977_v26 }
 0x27b   : > { %v981_v24 = vpop.xlane.xlu0 %980  ;;  %v973_v25 = vpop.xlane.xlu1 %972 }
 0x27c   : > { %v976_v27 = vmul.f32 0.03125, %v973_v25  ;;  %v984_v28 = vmul.f32 0.03125, %v981_v24 }
 0x27e   : > { %v986_v29 = vmul.f32 %v976_v27, %v976_v27  ;;  %v992_v44 = vsub.f32 %v818_v9, %v976_v27  ;;  %v839_v9 = vld [vmem:[#allocation4 + $0x10] sm:$0xff] }
 0x27f   : > { %v983_v30 = vpop.xlane.xlu1 %982 }
 0x280   : > { %v988_v32 = vsub.f32 %v984_v28, %v986_v29  ;;  %v985_v33 = vmul.f32 0.03125, %v983_v30 }
 0x282   : > { %v990_v35 = vmax.f32 %v988_v32, 0.0  ;;  %v989_v36 = vsub.f32 %v985_v33, %v987_v31 }
 0x284   : > { %v994_v37 = vadd.f32 1e-05, %v990_v35  ;;  %v991_v38 = vmax.f32 %v989_v36, 0.0 }
 0x286   : > { %1363 = vrsqrt.f32 %v994_v37  ;;  %v995_v40 = vadd.f32 1e-05, %v991_v38 }
 0x288   : > { %1365 = vrsqrt.f32 %v995_v40 }
 0x293   : > { %v1364_v45 = vpop.eup %1363 }
 0x294   : > { %v998_v48 = vmul.f32 %v1364_v45, %v992_v44 }
 0x295   : > { %v1366_v50 = vpop.eup %1365 }
 0x296   : > { %v1004_v51 = vmul.f32 %v1003_v43, %v998_v48  ;;  %v999_v52 = vmul.f32 %v1366_v50, %v993_v46 }
 0x298   : > { %v1010_v53 = vadd.f32 %v1009_v47, %v1004_v51  ;;  %v1005_v54 = vmul.f32 %v1003_v43, %v999_v52 }
 0x29a   : > { %v1239_v55 = vmul.f32 -1.442695, %v1010_v53  ;;  %v1011_v56 = vadd.f32 %v1009_v47, %v1005_v54 }
 0x29c   : > { %1367 = vpow2.f32 %v1239_v55  ;;  %v1240_v57 = vmul.f32 -1.442695, %v1011_v56 }
 0x29e   : > { %1369 = vpow2.f32 %v1240_v57 }
 0x2a9   : > { %v1368_v58 = vpop.eup %1367 }
 0x2aa   : > { %v1018_v59 = vadd.f32 1.0, %v1368_v58 }
 0x2ab   : > { %v1370_v61 = vpop.eup %1369 }
 0x2ac   : > { %1371 = vrcp.f32 %v1018_v59  ;;  %v1019_v62 = vadd.f32 1.0, %v1370_v61 }
 0x2ae   : > { %1373 = vrcp.f32 %v1019_v62 }
 0x2b9   : > { %v1372_v63 = vpop.eup %1371 }
 0x2ba   : > { %v1024_v1 = vmul.f32 %v1372_v63, %v1010_v53 }
 0x2bb   : > { %v1374_v2 = vpop.eup %1373 }
 0x2bc   : > { %v1026_v3 = vadd.f32 %v1024_v1, %v1844_v49  ;;  %v1025_v4 = vmul.f32 %v1374_v2, %v1011_v56 }
 0x2be   : > { %1028 = vst [vmem:[%s1606_s18] sm:$0xff] %v1026_v3  ;;  %v1027_v5 = vadd.f32 %v1025_v4, %v1880_v60 }
 0x2c0   : > { %1029 = vst [vmem:[%s1606_s18 + $0x8] sm:$0xff] %v1027_v5 }
 0x2d3   : > { %v951_v8 = vpop.f32.mrf.mxu0 }
 0x2d4   : > { %v962_v10 = vadd.f32 %v951_v8, %v838_v6 }
 0x2d5   : > { %v953_v11 = vpop.f32.mrf.mxu0 }
 0x2d6   : > { %966 = vst [vmem:[#allocation4 + $0x8] sm:$0xff] %v962_v10  ;;  %v963_v13 = vadd.f32 %v953_v11, %v839_v9 }
 0x2d7   : > { %v957_v14 = vpop.f32.mrf.mxu0 }
 0x2d8   : > { %967 = vst [vmem:[#allocation4 + $0x10] sm:$0xff] %v963_v13  ;;  %v964_v7 = vadd.f32 %v957_v14, %v840_v12  ;;  %1033 = sbr.rel (%p1241_p12) target bundleno = 965 (0x3c5), region = 60 }
 0x2d9   : > { %v959_v16 = vpop.f32.mrf.mxu0 }
 0x2da   : > { %968 = vst [vmem:[#allocation4] sm:$0xff] %v964_v7  ;;  %v965_v49 = vadd.f32 %v959_v16, %v841_v15 }
 0x2dc   : > { %969 = vst [vmem:[#allocation4 + $0x18] sm:$0xff] %v965_v49 }
 0x2dd   : > { %v1034_v20 = vld [vmem:[#allocation4 + $0x8] sm:$0xff]  ;;  %v1044_v23 = vld [vmem:[#allocation2 + $0x10] sm:$0xff]  ;;  %v1045_v26 = vld [vmem:[#allocation2 + $0x38] sm:$0xff]  ;;  %v1080_v50 = vsub.s32 0, %v1893_v34  ;;  %v1086_v51 = vsub.s32 1, %v1893_v34 }
 0x2de   : > { %v1049_v12 = vld [vmem:[%s1996_s0 + $0x8] sm:$0xff] }
 0x2df   : > { %v1036_v60 = vld [vmem:[#allocation4 + $0x10] sm:$0xff]  ;;  %v1081_v53 = vrot.slane %v1592_v0, %v1080_v50  ;;  %v1087_v55 = vrot.slane %v1592_v0, %v1086_v51  ;;  %v1048_v0 = vld [vmem:[%s1996_s0] sm:$0xff] }
 0x2e0   : > { %v1038_v17 = vadd.f32 1e-06, %v1036_v60 }
 0x2e1   : > { %v1035_v21 = vld [vmem:[#allocation4] sm:$0xff] }
 0x2e2   : > { %1375 = vrcp.f32 %v1038_v17 }
 0x2e3   : > { %v1037_v18 = vld [vmem:[#allocation4 + $0x18] sm:$0xff] }
 0x2e4   : > { %v1039_v19 = vadd.f32 1e-06, %v1037_v18 }
 0x2e6   : > { %1377 = vrcp.f32 %v1039_v19 }
 0x2ef   : > { %v1376_v22 = vpop.eup %1375 }
 0x2f0   : > { %v1041_v25 = vmul.f32 %v1376_v22, %v1034_v20 }
 0x2f2   : > { %v1046_v28 = vadd.f32 %v1044_v23, %v1041_v25 }
 0x2f3   : > { %v1378_v24 = vpop.eup %1377 }
 0x2f4   : > { %v1043_v27 = vmul.f32 %v1378_v24, %v1035_v21  ;;  %1050 = vadd.xlane.f32.xlu0 %v1046_v28  ;;  %v1056_v30 = vmul.f32 %v1046_v28, %v1046_v28 }
 0x2f6   : > { %v1047_v29 = vadd.f32 %v1045_v26, %v1043_v27  ;;  %1058 = vadd.xlane.f32.xlu1 %v1056_v30 }
 0x2f8   : > { %v1057_v31 = vmul.f32 %v1047_v29, %v1047_v29  ;;  %1052 = vadd.xlane.f32.xlu0 %v1047_v29 }
 0x2fa   : > { %1060 = vadd.xlane.f32.xlu1 %v1057_v31 }
 0x37d   : > { %v1051_v32 = vpop.xlane.xlu0 %1050 }
 0x37e   : > { %v1054_v33 = vmul.f32 0.03125, %v1051_v32 }
 0x37f   : > { %v1059_v35 = vpop.xlane.xlu1 %1058 }
 0x380   : > { %v1064_v36 = vmul.f32 %v1054_v33, %v1054_v33  ;;  %v1062_v37 = vmul.f32 0.03125, %v1059_v35  ;;  %v1070_v52 = vsub.f32 %v1046_v28, %v1054_v33 }
 0x381   : > { %v1053_v38 = vpop.xlane.xlu0 %1052 }
 0x382   : > { %v1066_v39 = vsub.f32 %v1062_v37, %v1064_v36  ;;  %v1055_v40 = vmul.f32 0.03125, %v1053_v38 }
 0x383   : > { %v1061_v41 = vpop.xlane.xlu1 %1060 }
 0x384   : > { %v1068_v42 = vmax.f32 %v1066_v39, 0.0  ;;  %v1065_v43 = vmul.f32 %v1055_v40, %v1055_v40  ;;  %v1063_v44 = vmul.f32 0.03125, %v1061_v41  ;;  %v1071_v58 = vsub.f32 %v1047_v29, %v1055_v40 }
 0x386   : > { %v1072_v45 = vadd.f32 1e-05, %v1068_v42  ;;  %v1067_v46 = vsub.f32 %v1063_v44, %v1065_v43 }
 0x388   : > { %1379 = vrsqrt.f32 %v1072_v45  ;;  %v1069_v47 = vmax.f32 %v1067_v46, 0.0 }
 0x38a   : > { %v1073_v48 = vadd.f32 1e-05, %v1069_v47 }
 0x38c   : > { %1381 = vrsqrt.f32 %v1073_v48 }
 0x395   : > { %v1380_v54 = vpop.eup %1379 }
 0x396   : > { %v1076_v56 = vmul.f32 %v1380_v54, %v1070_v52 }
 0x398   : > { %v1082_v57 = vmul.f32 %v1081_v53, %v1076_v56 }
 0x399   : > { %v1382_v59 = vpop.eup %1381 }
 0x39a   : > { %v1088_v61 = vadd.f32 %v1087_v55, %v1082_v57  ;;  %v1077_v62 = vmul.f32 %v1382_v59, %v1071_v58 }
 0x39c   : > { %v1242_v63 = vmul.f32 -1.442695, %v1088_v61  ;;  %v1083_v1 = vmul.f32 %v1081_v53, %v1077_v62 }
 0x39e   : > { %1383 = vpow2.f32 %v1242_v63  ;;  %v1089_v2 = vadd.f32 %v1087_v55, %v1083_v1 }
 0x3a0   : > { %v1243_v3 = vmul.f32 -1.442695, %v1089_v2 }
 0x3a2   : > { %1385 = vpow2.f32 %v1243_v3 }
 0x3ab   : > { %v1384_v4 = vpop.eup %1383 }
 0x3ac   : > { %v1096_v34 = vadd.f32 1.0, %v1384_v4 }
 0x3ae   : > { %1387 = vrcp.f32 %v1096_v34 }
 0x3af   : > { %v1386_v5 = vpop.eup %1385 }
 0x3b0   : > { %v1097_v6 = vadd.f32 1.0, %v1386_v5 }
 0x3b2   : > { %1389 = vrcp.f32 %v1097_v6 }
 0x3bb   : > { %v1388_v8 = vpop.eup %1387 }
 0x3bc   : > { %v1102_v9 = vmul.f32 %v1388_v8, %v1088_v61 }
 0x3be   : > { %v1104_v10 = vadd.f32 %v1102_v9, %v1048_v0 }
 0x3bf   : > { %v1390_v11 = vpop.eup %1389 }
 0x3c0   : > { %1106 = vst [vmem:[#allocation6] sm:$0xff] %v1104_v10  ;;  %v1103_v13 = vmul.f32 %v1390_v11, %v1089_v2 }
 0x3c2   : > { %v1105_v14 = vadd.f32 %v1103_v13, %v1049_v12 }
 0x3c4   : > { %1107 = vst [vmem:[#allocation6 + $0x8] sm:$0xff] %v1105_v14 }
 0x3c5 PF: > { %s1483_s16 = smov [#allocation6]  }
 0x3c6   : > { %s1119_s23 = sshll.u32 %s1483_s16, 4  ;;  %s1120_s23 = int_to_ptr.vmem [resolvable:$true] %s1119_s23 }
 0x3c7   : > { %s1391_s24 = scalar_lea.vmem %s1120_s23, 256  ;;  %p1398_p3 = scmp.lt.s32.totalorder %s1120_s23, %s1120_s23 }
 0x3c8   : > { %p1392_p13 = scmp.ne.s32.totalorder %s1120_s23, %s1391_s24  ;;  %p1399_p4 = scmp.lt.s32.totalorder %s1391_s24, %s1391_s24 }
 0x3ca   : > { %p1393_p0 = pnand %p1392_p13, %p241_p2  ;;  %p1400_p7 = por %p1399_p4, %p1398_p3 }
 0x3cc   : > { %p1394_p1 = pneg %p1393_p0 }
 0x3ce   : > { %p1401_p8 = pnand %p1400_p7, %p1394_p1 }
 0x3d0   : > { %1404 = shalt.err (!%p1401_p8)
}
 0x3d1   : > { %s1484_s21 = smov 128   ;;  %s1485_s22 = smov 8  }
 0x3d2   : > { %1306 = dma.vmem_to_hbm [thread:$0]  (%p241_p2), %s1120_s23, 256, %s1988_s8, [#allocation7], %s1484_s21, %s1484_s21, %s1485_s22  }
 0x3d3   : > { %s1251_s28 = sshll.u32 %s1558_s13, 8  ;;  %s1135_s29 = sshll.u32 %s1606_s18, 4  ;;  %s1932_s29 = int_to_ptr.vmem [resolvable:$true] %s1135_s29 }
 0x3d4   : > { %s1930_s14 = scalar_lea.hbm %s1989_s9, %s1251_s28  ;;  %s1997_s16 = sand.u32 1, %s1471_s10  }
 0x3d5   : > { %s1109_s24 = scalar_lea.sflag [#allocation9], %s1997_s16  ;;  %s1415_s0 = scalar_lea.vmem %s1932_s29, 256 }
 0x3d6   : > { %p1416_p9 = scmp.ne.s32.totalorder %s1932_s29, %s1415_s0  ;;  %s1486_s23 = smov [#allocation8]  }
 0x3d7   : > { %s1419_s17 = sshll.u32 %s1486_s23, 4  ;;  %s1420_s17 = int_to_ptr.vmem [resolvable:$false] %s1419_s17 }
 0x3d8   : > { %p1417_p10 = pnand %p1416_p9, %p1577_p5  ;;  %s1421_s18 = scalar_lea.vmem %s1420_s17, 512 }
 0x3d9   : > { %p1422_p12 = scmp.lt.s32.totalorder %s1932_s29, %s1420_s17  ;;  %p1423_p13 = scmp.lt.s32.totalorder %s1421_s18, %s1415_s0 }
 0x3da   : > { %p1418_p11 = pneg %p1417_p10 }
 0x3db   : > { %p1424_p0 = por %p1423_p13, %p1422_p12 }
 0x3dd   : > { %p1425_p1 = pnand %p1424_p0, %p1418_p11 }
 0x3df   : > { %1428 = shalt.err (!%p1425_p1)
}
 0x3e0   : > { %s1429_s27 = scalar_lea.hbm %s1930_s14, 256  ;;  %s1433_s25 = scalar_lea.hbm %s1989_s9, 512 }
 0x3e1   : > { %p1430_p3 = scmp.ne.s32.totalorder %s1930_s14, %s1429_s27  ;;  %p1434_p8 = scmp.lt.s32.totalorder %s1930_s14, %s1989_s9 }
 0x3e2   : > { %p1435_p9 = scmp.lt.s32.totalorder %s1433_s25, %s1429_s27 }
 0x3e3   : > { %p1431_p4 = pnand %p1430_p3, %p1577_p5 }
 0x3e4   : > { %p1436_p10 = por %p1435_p9, %p1434_p8 }
 0x3e5   : > { %p1432_p7 = pneg %p1431_p4 }
 0x3e7   : > { %p1437_p11 = pnand %p1436_p10, %p1432_p7 }
 0x3e9   : > { %1440 = shalt.err (!%p1437_p11)
}
 0x3ea   : > { %1307 = dma.vmem_to_hbm [thread:$0]  (%p1577_p5), %s1932_s29, 256, %s1930_s14, %s1109_s24, %s1484_s21, %s1484_s21, %s1485_s22  }
 0x3eb   : > { %1458 = dma.done.wait (%p241_p2), [#allocation7], 256  }
 0x3ec   : > { %1460 = vsyncadd (%p241_p2), [#allocation7], 4294967040 }
 0x3ed PF: > { %p1317_p12 = scmp.ge.s32.totalorder %s1479_s12, 2  ;;  %s1154_s0 = sand.u32 1, %s1467_s30  }
 0x3ee   : > { %s1155_s19 = scalar_lea.sflag [#allocation9], %s1154_s0 }
 0x3ef   : > { %p1312_p13 = pnand %p1317_p12, %p1581_p6 }
 0x3f1   : > { %p1313_p0 = pneg %p1312_p13 }
 0x3f3   : > { %1462 = dma.done.wait (%p1313_p0), %s1155_s19, 256  }
 0x3f4   : > { %1464 = vsyncadd (%p1313_p0), %s1155_s19, 4294967040  ;;  %s1998_s21 = sld [smem:[#allocation12_spill]]  ;;  %p21_p5 = scmp.ge.s32.totalorder %s1562_s15, 4  }
 0x3f5   : > { %s1999_s30 = smov %s1471_s10  ;;  %s2000_s10 = smov %s1475_s11 }
 0x3f6   : > { %s2002_s12 = smov %s1562_s15  ;;  %23 = sbr.rel (!%p21_p5) target bundleno = 6 (0x6), region = 107 }
 0x3fa   : > { %s2001_s11 = smov %s1998_s21 }
 0x3fb   :  { %1160 = vsyncpa [#allocation7], 1 }
 0x3fc   :  { %1162 = vsyncpa [#allocation7 + $0x1], 1 }
 0x3fd   :  { %1163 = vsyncpa [#allocation9], 1 }
 0x3fe   :  { %1165 = vsyncpa [#allocation9 + $0x1], 1 }

// kernel: alignn_layer.2
= control target key start
LH: loop header
LB: loop body
LE: loop exit
PB: predicated region body
PF: predicated region fallthrough
CT: control target
= control target key end

     0   :  { %s1538_s30 = smov 0   ;;  %s1934_s0 = inlined_call_operand.vmem [shape: f32[32,128], index: 0, kind: input, shape index: {}]   ;;  %s1935_s1 = inlined_call_operand.vmem [shape: f32[48,128], index: 1, kind: input, shape index: {}]   ;;  %s1936_s2 = inlined_call_operand.vmem [shape: f32[48,64], index: 2, kind: input, shape index: {}]   ;;  %s1937_s3 = inlined_call_operand.vmem [shape: f32[128,512], index: 3, kind: input, shape index: {}]   ;;  %s1938_s4 = inlined_call_operand.vmem [shape: f32[1,512], index: 4, kind: input, shape index: {}]   ;;  %s1939_s5 = inlined_call_operand.vmem [shape: f32[128,128], index: 5, kind: input, shape index: {}]   ;;  %s1940_s6 = inlined_call_operand.vmem [shape: f32[1,128], index: 6, kind: input, shape index: {}]   ;;  %s1941_s7 = inlined_call_operand.vmem [shape: f32[4,128], index: 7, kind: input, shape index: {}]   ;;  %s1942_s8 = inlined_call_operand.vmem [shape: f32[32,128], index: 8, kind: output, shape index: {0}]   ;;  %s1943_s9 = inlined_call_operand.vmem [shape: f32[48,128], index: 9, kind: output, shape index: {1}]  }
   0x1 LB: > { %s1544_s10 = sadd.s32 4294967295, %s1484_s30   ;;  %p1337_p0 = scmp.ge.s32.totalorder %s1484_s30, 1  ;;  %s1484_s30 = sphi %s1538_s30, %s20_s30  }
   0x2   : > { %p297_p1 = scmp.lt.s32.totalorder %s1484_s30, 4 }
   0x4   : > { %p298_p2 = pnand %p1337_p0, %p297_p1 }
   0x5   : > { %s1338_s11 = sshll.u32 (!%p298_p2), %s1544_s10, 1  ;;  %p1344_p4 = scmp.ne.s32.totalorder (!%p298_p2), %s1544_s10, 0 }
   0x6   : > { %301 = sbr.rel (%p298_p2) target bundleno = 979 (0x3d3), region = 52  ;;  %p339_p3 = scmp.lt.s32.totalorder (!%p298_p2), %s1338_s11, 5 }
   0xb   : > { %v1552_v0 = vld [vmem:[%s1941_s7] sm:$0xf]  ;;  %s1945_s11 = smov (!%p339_p3, %s1338_s11), 5  ;;  %360 = sbr.rel (%p1344_p4) target bundleno = 260 (0x104), region = 56 }
   0xc   : > { %s1339_s14 = sshll.u32 %s1945_s11, 3 }
   0xd   : > { %s1557_s17 = scalar_lea.vmem %s1935_s1, %s1339_s14  ;;  %s1562_s20 = scalar_lea.vmem %s1936_s2, %s1339_s14 }
   0xe   : > { %s1567_s23 = scalar_lea.vmem %s1943_s9, %s1339_s14 }
  0x10   : > { %v426_v1 = vld [vmem:[%s1937_s3 + $0x1e8] sm:$0xff]  ;;  %v428_v2 = vld [vmem:[%s1937_s3 + $0x1f8] sm:$0xff]  ;;  %v425_v3 = vld [vmem:[%s1937_s3 + $0x1e0] sm:$0xff]  ;;  %v1486_v7 = vmov 0.0  }
  0x11   : > { %451 = vmatprep.subr.mxu0 %v426_v1  ;;  %540 = vmatprep.subr.mxu1 %v428_v2  ;;  %v427_v4 = vld [vmem:[%s1937_s3 + $0x1f0] sm:$0xff]  ;;  %v422_v5 = vld [vmem:[%s1937_s3 + $0x1c8] sm:$0xff]  ;;  %v424_v6 = vld [vmem:[%s1937_s3 + $0x1d8] sm:$0xff]  ;;  %649 = vst [vmem:[#allocation3 + $0x48] sm:$0xff] %v1486_v7 }
  0x12   : > { %650 = vst [vmem:[#allocation3 + $0x28] sm:$0xff] %v1486_v7  ;;  %651 = vst [vmem:[#allocation3 + $0x70] sm:$0xff] %v1486_v7  ;;  %452 = vmatpush1.msra.mxu0 %v425_v3  ;;  %541 = vmatpush1.msra.mxu1 %v427_v4  ;;  %v421_v8 = vld [vmem:[%s1937_s3 + $0x1c0] sm:$0xff]  ;;  %v423_v9 = vld [vmem:[%s1937_s3 + $0x1d0] sm:$0xff] }
  0x13   : > { %652 = vst [vmem:[#allocation3 + $0x38] sm:$0xff] %v1486_v7  ;;  %661 = vst [vmem:[#allocation4 + $0x8] sm:$0xff] %v1486_v7  ;;  %v418_v10 = vld [vmem:[%s1937_s3 + $0x1a8] sm:$0xff]  ;;  %453 = vmatprep.subr.mxu0 %v422_v5  ;;  %542 = vmatprep.subr.mxu1 %v424_v6  ;;  %v420_v11 = vld [vmem:[%s1937_s3 + $0x1b8] sm:$0xff] }
  0x14   : > { %662 = vst [vmem:[#allocation4] sm:$0xff] %v1486_v7  ;;  %663 = vst [vmem:[#allocation4 + $0x18] sm:$0xff] %v1486_v7  ;;  %v417_v12 = vld [vmem:[%s1937_s3 + $0x1a0] sm:$0xff]  ;;  %v419_v13 = vld [vmem:[%s1937_s3 + $0x1b0] sm:$0xff]  ;;  %454 = vmatpush1.msra.mxu0 %v421_v8  ;;  %543 = vmatpush1.msra.mxu1 %v423_v9  ;;  %v431_v8 = vlaneseq }
  0x15   : > { %664 = vst [vmem:[#allocation4 + $0x20] sm:$0xff] %v1486_v7  ;;  %665 = vst [vmem:[#allocation4 + $0x38] sm:$0xff] %v1486_v7  ;;  %v414_v14 = vld [vmem:[%s1937_s3 + $0x188] sm:$0xff]  ;;  %v416_v15 = vld [vmem:[%s1937_s3 + $0x198] sm:$0xff]  ;;  %455 = vmatprep.subr.mxu0 %v418_v10  ;;  %544 = vmatprep.subr.mxu1 %v420_v11 }
  0x16   : > { %666 = vst [vmem:[#allocation4 + $0x28] sm:$0xff] %v1486_v7  ;;  %667 = vst [vmem:[#allocation4 + $0x30] sm:$0xff] %v1486_v7  ;;  %v413_v16 = vld [vmem:[%s1937_s3 + $0x180] sm:$0xff]  ;;  %v415_v17 = vld [vmem:[%s1937_s3 + $0x190] sm:$0xff]  ;;  %456 = vmatpush1.msra.mxu0 %v417_v12  ;;  %545 = vmatpush1.msra.mxu1 %v419_v13  ;;  %v432_v9 = vshrl.u32 %v431_v8, 7 }
  0x17   : > { %668 = vst [vmem:[#allocation4 + $0x10] sm:$0xff] %v1486_v7  ;;  %v410_v18 = vld [vmem:[%s1937_s3 + $0x168] sm:$0xff]  ;;  %v412_v19 = vld [vmem:[%s1937_s3 + $0x178] sm:$0xff]  ;;  %457 = vmatprep.subr.mxu0 %v414_v14  ;;  %546 = vmatprep.subr.mxu1 %v416_v15  ;;  %v409_v20 = vld [vmem:[%s1937_s3 + $0x160] sm:$0xff] }
  0x18   : > { %v411_v21 = vld [vmem:[%s1937_s3 + $0x170] sm:$0xff]  ;;  %458 = vmatpush1.msra.mxu0 %v413_v16  ;;  %547 = vmatpush1.msra.mxu1 %v415_v17  ;;  %v406_v22 = vld [vmem:[%s1937_s3 + $0x148] sm:$0xff]  ;;  %v408_v23 = vld [vmem:[%s1937_s3 + $0x158] sm:$0xff]  ;;  %v433_v10 = vsub.s32 0, %v432_v9  ;;  %v441_v11 = vsub.s32 2, %v432_v9  ;;  %v437_v13 = vsub.s32 1, %v432_v9 }
  0x19   : > { %459 = vmatprep.subr.mxu0 %v410_v18  ;;  %548 = vmatprep.subr.mxu1 %v412_v19  ;;  %v405_v24 = vld [vmem:[%s1937_s3 + $0x140] sm:$0xff]  ;;  %v407_v25 = vld [vmem:[%s1937_s3 + $0x150] sm:$0xff]  ;;  %v402_v26 = vld [vmem:[%s1937_s3 + $0x128] sm:$0xff]  ;;  %v445_v14 = vsub.s32 3, %v432_v9 }
  0x1a   : > { %460 = vmatpush1.msra.mxu0 %v409_v20  ;;  %549 = vmatpush1.msra.mxu1 %v411_v21  ;;  %v404_v27 = vld [vmem:[%s1937_s3 + $0x138] sm:$0xff]  ;;  %v401_v28 = vld [vmem:[%s1937_s3 + $0x120] sm:$0xff]  ;;  %v403_v29 = vld [vmem:[%s1937_s3 + $0x130] sm:$0xff] }
  0x1b   : > { %461 = vmatprep.subr.mxu0 %v406_v22  ;;  %550 = vmatprep.subr.mxu1 %v408_v23  ;;  %v398_v30 = vld [vmem:[%s1937_s3 + $0x108] sm:$0xff]  ;;  %v400_v31 = vld [vmem:[%s1937_s3 + $0x118] sm:$0xff]  ;;  %v397_v32 = vld [vmem:[%s1937_s3 + $0x100] sm:$0xff] }
  0x1c   : > { %462 = vmatpush1.msra.mxu0 %v405_v24  ;;  %551 = vmatpush1.msra.mxu1 %v407_v25  ;;  %v399_v33 = vld [vmem:[%s1937_s3 + $0x110] sm:$0xff]  ;;  %v394_v34 = vld [vmem:[%s1937_s3 + $0xe8] sm:$0xff]  ;;  %v396_v35 = vld [vmem:[%s1937_s3 + $0xf8] sm:$0xff] }
  0x1d   : > { %463 = vmatprep.subr.mxu0 %v402_v26  ;;  %552 = vmatprep.subr.mxu1 %v404_v27  ;;  %v393_v36 = vld [vmem:[%s1937_s3 + $0xe0] sm:$0xff]  ;;  %v395_v37 = vld [vmem:[%s1937_s3 + $0xf0] sm:$0xff]  ;;  %v390_v38 = vld [vmem:[%s1937_s3 + $0xc8] sm:$0xff] }
  0x1e   : > { %464 = vmatpush1.msra.mxu0 %v401_v28  ;;  %553 = vmatpush1.msra.mxu1 %v403_v29  ;;  %v392_v39 = vld [vmem:[%s1937_s3 + $0xd8] sm:$0xff]  ;;  %v389_v40 = vld [vmem:[%s1937_s3 + $0xc0] sm:$0xff]  ;;  %v391_v41 = vld [vmem:[%s1937_s3 + $0xd0] sm:$0xff] }
  0x1f   : > { %465 = vmatprep.subr.mxu0 %v398_v30  ;;  %554 = vmatprep.subr.mxu1 %v400_v31  ;;  %v386_v42 = vld [vmem:[%s1937_s3 + $0xa8] sm:$0xff]  ;;  %v388_v43 = vld [vmem:[%s1937_s3 + $0xb8] sm:$0xff]  ;;  %v385_v44 = vld [vmem:[%s1937_s3 + $0xa0] sm:$0xff] }
  0x20   : > { %466 = vmatpush1.msra.mxu0 %v397_v32  ;;  %555 = vmatpush1.msra.mxu1 %v399_v33  ;;  %v387_v45 = vld [vmem:[%s1937_s3 + $0xb0] sm:$0xff]  ;;  %v382_v46 = vld [vmem:[%s1937_s3 + $0x88] sm:$0xff]  ;;  %v384_v47 = vld [vmem:[%s1937_s3 + $0x98] sm:$0xff] }
  0x21   : > { %467 = vmatprep.subr.mxu0 %v394_v34  ;;  %556 = vmatprep.subr.mxu1 %v396_v35  ;;  %v381_v48 = vld [vmem:[%s1937_s3 + $0x80] sm:$0xff]  ;;  %v383_v49 = vld [vmem:[%s1937_s3 + $0x90] sm:$0xff]  ;;  %v378_v50 = vld [vmem:[%s1937_s3 + $0x68] sm:$0xff] }
  0x22   : > { %468 = vmatpush1.msra.mxu0 %v393_v36  ;;  %557 = vmatpush1.msra.mxu1 %v395_v37  ;;  %v380_v51 = vld [vmem:[%s1937_s3 + $0x78] sm:$0xff]  ;;  %v377_v52 = vld [vmem:[%s1937_s3 + $0x60] sm:$0xff]  ;;  %v379_v53 = vld [vmem:[%s1937_s3 + $0x70] sm:$0xff] }
  0x23   : > { %469 = vmatprep.subr.mxu0 %v390_v38  ;;  %558 = vmatprep.subr.mxu1 %v392_v39  ;;  %v374_v54 = vld [vmem:[%s1937_s3 + $0x48] sm:$0xff]  ;;  %v376_v55 = vld [vmem:[%s1937_s3 + $0x58] sm:$0xff]  ;;  %v373_v56 = vld [vmem:[%s1937_s3 + $0x40] sm:$0xff] }
  0x24   : > { %470 = vmatpush1.msra.mxu0 %v389_v40  ;;  %559 = vmatpush1.msra.mxu1 %v391_v41  ;;  %v375_v57 = vld [vmem:[%s1937_s3 + $0x50] sm:$0xff]  ;;  %v370_v58 = vld [vmem:[%s1937_s3 + $0x28] sm:$0xff]  ;;  %v372_v59 = vld [vmem:[%s1937_s3 + $0x38] sm:$0xff] }
  0x25   : > { %471 = vmatprep.subr.mxu0 %v386_v42  ;;  %560 = vmatprep.subr.mxu1 %v388_v43  ;;  %v369_v60 = vld [vmem:[%s1937_s3 + $0x20] sm:$0xff]  ;;  %v371_v61 = vld [vmem:[%s1937_s3 + $0x30] sm:$0xff]  ;;  %v366_v62 = vld [vmem:[%s1937_s3 + $0x8] sm:$0xff] }
  0x26   : > { %472 = vmatpush1.msra.mxu0 %v385_v44  ;;  %561 = vmatpush1.msra.mxu1 %v387_v45  ;;  %v368_v63 = vld [vmem:[%s1937_s3 + $0x18] sm:$0xff]  ;;  %v365_v1 = vld [vmem:[%s1937_s3] sm:$0xff]  ;;  %v367_v2 = vld [vmem:[%s1937_s3 + $0x10] sm:$0xff] }
  0x27   : > { %473 = vmatprep.subr.mxu0 %v382_v46  ;;  %562 = vmatprep.subr.mxu1 %v384_v47  ;;  %v361_v3 = vld [vmem:[%s1934_s0] sm:$0xff]  ;;  %v362_v4 = vld [vmem:[%s1934_s0 + $0x8] sm:$0xff]  ;;  %v363_v5 = vld [vmem:[%s1934_s0 + $0x10] sm:$0xff] }
  0x28   : > { %474 = vmatpush1.msra.mxu0 %v381_v48  ;;  %563 = vmatpush1.msra.mxu1 %v383_v49  ;;  %v364_v6 = vld [vmem:[%s1934_s0 + $0x18] sm:$0xff]  ;;  %v429_v12 = vld [vmem:[%s1938_s4] sm:$0xf] }
  0x29   : > { %475 = vmatprep.subr.mxu0 %v378_v50  ;;  %564 = vmatprep.subr.mxu1 %v380_v51  ;;  %v434_v15 = vrot.slane %v429_v12, %v433_v10  ;;  %v442_v16 = vrot.slane %v429_v12, %v441_v11  ;;  %v438_v17 = vrot.slane %v429_v12, %v437_v13 }
  0x2a   : > { %476 = vmatpush1.msra.mxu0 %v377_v52  ;;  %565 = vmatpush1.msra.mxu1 %v379_v53 }
  0x2b   : > { %477 = vmatprep.subr.mxu0 %v374_v54  ;;  %566 = vmatprep.subr.mxu1 %v376_v55 }
  0x2c   : > { %478 = vmatpush1.msra.mxu0 %v373_v56  ;;  %567 = vmatpush1.msra.mxu1 %v375_v57 }
  0x2d   : > { %479 = vmatprep.subr.mxu0 %v370_v58  ;;  %568 = vmatprep.subr.mxu1 %v372_v59 }
  0x2e   : > { %480 = vmatpush1.msra.mxu0 %v369_v60  ;;  %569 = vmatpush1.msra.mxu1 %v371_v61 }
  0x2f   : > { %481 = vmatprep.subr.mxu0 %v366_v62  ;;  %570 = vmatprep.subr.mxu1 %v368_v63 }
  0x30   : > { %482 = vmatpush1.msra.mxu0 %v365_v1  ;;  %515 = vmatprep.mubr.f32.mxu0 %v1486_v7 }
  0x31   : > { %571 = vmatpush1.msra.mxu1 %v367_v2  ;;  %604 = vmatprep.mubr.f32.mxu1 %v1486_v7 }
  0x32   : > { %516 = vmatmul.mubr.f32.vlgmr.msra.gmra.mxu0 %v361_v3  ;;  %605 = vmatmul.mubr.f32.vlgmr.msra.gmra.mxu1 %v361_v3 }
  0x33   : > { %521 = vmatprep.mubr.f32.mxu0 %v1486_v7  ;;  %610 = vmatprep.mubr.f32.mxu1 %v1486_v7 }
  0x36   : > { %522 = vmatmul.mubr.f32.gmra.mxu0 %v362_v4  ;;  %611 = vmatmul.mubr.f32.gmra.mxu1 %v362_v4 }
  0x37   : > { %527 = vmatprep.mubr.f32.mxu0 %v1486_v7  ;;  %616 = vmatprep.mubr.f32.mxu1 %v1486_v7 }
  0x3a   : > { %528 = vmatmul.mubr.f32.gmra.mxu0 %v363_v5  ;;  %617 = vmatmul.mubr.f32.gmra.mxu1 %v363_v5 }
  0x3b   : > { %533 = vmatprep.mubr.f32.mxu0 %v1486_v7  ;;  %622 = vmatprep.mubr.f32.mxu1 %v1486_v7  ;;  %v446_v7 = vrot.slane %v429_v12, %v445_v14 }
  0x3e   : > { %534 = vmatmul.mubr.f32.gmra.mxu0 %v364_v6  ;;  %623 = vmatmul.mubr.f32.gmra.mxu1 %v364_v6 }
  0xf2   : > { %v517_v18 = vpop.f32.mrf.mxu0  ;;  %v606_v19 = vpop.f32.mrf.mxu1 }
  0xf3   : > { %v518_v20 = vadd.f32 %v517_v18, %v434_v15  ;;  %v607_v21 = vadd.f32 %v606_v19, %v442_v16 }
  0xf4   : > { %v519_v22 = vpop.f32.mrf.mxu0  ;;  %v608_v23 = vpop.f32.mrf.mxu1 }
  0xf5   : > { %653 = vst [vmem:[#allocation3 + $0x8] sm:$0xff] %v518_v20  ;;  %645 = vst [vmem:[#allocation3 + $0x18] sm:$0xff] %v607_v21  ;;  %v520_v24 = vadd.f32 %v519_v22, %v438_v17  ;;  %v609_v25 = vadd.f32 %v608_v23, %v446_v7 }
  0xf6   : > { %v523_v26 = vpop.f32.mrf.mxu0  ;;  %v612_v27 = vpop.f32.mrf.mxu1 }
  0xf7   : > { %654 = vst [vmem:[#allocation3 + $0x78] sm:$0xff] %v520_v24  ;;  %632 = vst [vmem:[#allocation2 + $0x18] sm:$0xff] %v609_v25  ;;  %v524_v28 = vadd.f32 %v523_v26, %v434_v15  ;;  %v613_v29 = vadd.f32 %v612_v27, %v442_v16 }
  0xf8   : > { %v525_v30 = vpop.f32.mrf.mxu0  ;;  %v614_v31 = vpop.f32.mrf.mxu1 }
  0xf9   : > { %655 = vst [vmem:[#allocation3 + $0x30] sm:$0xff] %v524_v28  ;;  %646 = vst [vmem:[#allocation3 + $0x68] sm:$0xff] %v613_v29  ;;  %v526_v32 = vadd.f32 %v525_v30, %v438_v17  ;;  %v615_v33 = vadd.f32 %v614_v31, %v446_v7 }
  0xfa   : > { %v529_v34 = vpop.f32.mrf.mxu0  ;;  %v618_v35 = vpop.f32.mrf.mxu1 }
  0xfb   : > { %656 = vst [vmem:[#allocation3 + $0x58] sm:$0xff] %v526_v32  ;;  %636 = vst [vmem:[#allocation2 + $0x48] sm:$0xff] %v615_v33  ;;  %v530_v36 = vadd.f32 %v529_v34, %v434_v15  ;;  %v619_v37 = vadd.f32 %v618_v35, %v442_v16 }
  0xfc   : > { %v531_v38 = vpop.f32.mrf.mxu0  ;;  %v620_v39 = vpop.f32.mrf.mxu1 }
  0xfd   : > { %657 = vst [vmem:[#allocation3] sm:$0xff] %v530_v36  ;;  %647 = vst [vmem:[#allocation3 + $0x20] sm:$0xff] %v619_v37  ;;  %v532_v40 = vadd.f32 %v531_v38, %v438_v17  ;;  %v621_v41 = vadd.f32 %v620_v39, %v446_v7 }
  0xfe   : > { %v535_v42 = vpop.f32.mrf.mxu0  ;;  %v624_v43 = vpop.f32.mrf.mxu1 }
  0xff   : > { %658 = vst [vmem:[#allocation3 + $0x10] sm:$0xff] %v532_v40  ;;  %640 = vst [vmem:[#allocation2 + $0x38] sm:$0xff] %v621_v41  ;;  %v536_v44 = vadd.f32 %v535_v42, %v434_v15  ;;  %v625_v45 = vadd.f32 %v624_v43, %v442_v16 }
 0x100   : > { %v537_v46 = vpop.f32.mrf.mxu0  ;;  %v626_v47 = vpop.f32.mrf.mxu1 }
 0x101   : > { %659 = vst [vmem:[#allocation3 + $0x60] sm:$0xff] %v536_v44  ;;  %648 = vst [vmem:[#allocation3 + $0x40] sm:$0xff] %v625_v45  ;;  %v538_v48 = vadd.f32 %v537_v46, %v438_v17  ;;  %v627_v49 = vadd.f32 %v626_v47, %v446_v7 }
 0x103   : > { %660 = vst [vmem:[#allocation3 + $0x50] sm:$0xff] %v538_v48  ;;  %644 = vst [vmem:[#allocation2 + $0x28] sm:$0xff] %v627_v49 }
 0x104 PF: > { %v788_v50 = vld [vmem:[%s1939_s5 + $0x78] sm:$0xff]  ;;  %v787_v51 = vld [vmem:[%s1939_s5 + $0x70] sm:$0xff]  ;;  %v1487_v53 = vmov 0.0   ;;  %v786_v54 = vld [vmem:[%s1939_s5 + $0x68] sm:$0xff]  ;;  %vm687_vm0 = vcmask 523264   ;;  %vm937_vm1 = vcmask 130048  }
 0x105   : > { %1381 = vmatprep.subr.mxu1 %v788_v50  ;;  %758 = vmatprep.mubr.f32.mxu0 %v1487_v53  ;;  %v683_v57 = vld [vmem:[#allocation3] sm:$0xff]  ;;  %v682_v58 = vld [vmem:[#allocation3 + $0x58] sm:$0xff]  ;;  %v681_v60 = vld [vmem:[#allocation3 + $0x30] sm:$0xff]  ;;  %p1356_p5 = scmp.ne.s32.totalorder %s1544_s10, 2 }
 0x106   : > { %1382 = vmatpush3.msra.mxu1 %v788_v50  ;;  %v684_v56 = vld [vmem:[#allocation3 + $0x10] sm:$0xff]  ;;  %v785_v59 = vld [vmem:[%s1939_s5 + $0x60] sm:$0xff]  ;;  %v680_v61 = vld [vmem:[#allocation3 + $0x78] sm:$0xff] }
 0x107   : > { %1383 = vmatprep.subr.mxu1 %v787_v51  ;;  %v784_v62 = vld [vmem:[%s1939_s5 + $0x58] sm:$0xff]  ;;  %v679_v63 = vld [vmem:[#allocation3 + $0x8] sm:$0xff]  ;;  %v783_v2 = vld [vmem:[%s1939_s5 + $0x50] sm:$0xff] }
 0x108   : > { %v685_v55 = vld [vmem:[#allocation3 + $0x60] sm:$0xff]  ;;  %1384 = vmatpush3.msra.mxu1 %v787_v51  ;;  %v678_v1 = vld [vmem:[#allocation3 + $0x38] sm:$0xff]  ;;  %v676_v4 = vld [vmem:[#allocation3 + $0x70] sm:$0xff] }
 0x109   : > { %1385 = vmatprep.subr.mxu1 %v786_v54  ;;  %v677_v3 = vld [vmem:[#allocation3 + $0x40] sm:$0xff]  ;;  %v782_v5 = vld [vmem:[%s1939_s5 + $0x48] sm:$0xff]  ;;  %v780_v12 = vld [vmem:[%s1939_s5 + $0x38] sm:$0xff] }
 0x10a   : > { %v686_v52 = vld [vmem:[#allocation3 + $0x50] sm:$0xff]  ;;  %1386 = vmatpush3.msra.mxu1 %v786_v54  ;;  %v675_v6 = vld [vmem:[#allocation3 + $0x20] sm:$0xff]  ;;  %v674_v8 = vld [vmem:[#allocation3 + $0x28] sm:$0xff] }
 0x10b   : > { %710 = vmatprep.subr.mxu0 %v686_v52  ;;  %1387 = vmatprep.subr.mxu1 %v785_v59  ;;  %v781_v9 = vld [vmem:[%s1939_s5 + $0x40] sm:$0xff]  ;;  %v673_v10 = vld [vmem:[#allocation3 + $0x68] sm:$0xff]  ;;  %v671_v13 = vld [vmem:[#allocation3 + $0x18] sm:$0xff] }
 0x10c   : > { %711 = vmatpush1.msra.mxu0 %v685_v55  ;;  %1388 = vmatpush3.msra.mxu1 %v785_v59  ;;  %v672_v11 = vld [vmem:[#allocation3 + $0x48] sm:$0xff]  ;;  %v669_v14 = vld [vmem:[%s1562_s20] sm:$0xff]  ;;  %v779_v15 = vld [vmem:[%s1939_s5 + $0x30] sm:$0xff] }
 0x10d   : > { %712 = vmatprep.subr.mxu0 %v684_v56  ;;  %1389 = vmatprep.subr.mxu1 %v784_v62  ;;  %v1830_v16 = vld [vmem:[%s1557_s17] sm:$0xff]  ;;  %v778_v17 = vld [vmem:[%s1939_s5 + $0x28] sm:$0xff]  ;;  %v776_v19 = vld [vmem:[%s1939_s5 + $0x18] sm:$0xff] }
 0x10e   : > { %713 = vmatpush1.msra.mxu0 %v683_v57  ;;  %1390 = vmatpush3.msra.mxu1 %v784_v62  ;;  %v670_v7 = vld [vmem:[%s1562_s20 + $0x8] sm:$0xff]  ;;  %v777_v18 = vld [vmem:[%s1939_s5 + $0x20] sm:$0xff]  ;;  %v775_v20 = vld [vmem:[%s1939_s5 + $0x10] sm:$0xff] }
 0x10f   : > { %714 = vmatprep.subr.mxu0 %v682_v58  ;;  %1391 = vmatprep.subr.mxu1 %v783_v2  ;;  %v774_v21 = vld [vmem:[%s1939_s5 + $0x8] sm:$0xff]  ;;  %v773_v22 = vld [vmem:[%s1939_s5] sm:$0xff] }
 0x110   : > { %715 = vmatpush1.msra.mxu0 %v681_v60  ;;  %1392 = vmatpush3.msra.mxu1 %v783_v2  ;;  %v1857_v23 = vld [vmem:[%s1557_s17 + $0x8] sm:$0xff]  ;;  %v1347_v28 = vld [vmem:[%s1940_s6] ss:$0 sm:$0xff] }
 0x111   : > { %716 = vmatprep.subr.mxu0 %v680_v61  ;;  %1393 = vmatprep.subr.mxu1 %v782_v5 }
 0x112   : > { %717 = vmatpush1.msra.mxu0 %v679_v63  ;;  %1394 = vmatpush3.msra.mxu1 %v782_v5 }
 0x113   : > { %718 = vmatprep.subr.mxu0 %v678_v1  ;;  %1395 = vmatprep.subr.mxu1 %v781_v9 }
 0x114   : > { %719 = vmatpush1.msra.mxu0 %v677_v3  ;;  %1396 = vmatpush3.msra.mxu1 %v781_v9 }
 0x115   : > { %720 = vmatprep.subr.mxu0 %v676_v4  ;;  %1397 = vmatprep.subr.mxu1 %v780_v12  ;;  %v1085_v4 = vlaneseq }
 0x116   : > { %721 = vmatpush1.msra.mxu0 %v675_v6  ;;  %1398 = vmatpush3.msra.mxu1 %v780_v12 }
 0x117   : > { %722 = vmatprep.subr.mxu0 %v674_v8  ;;  %1399 = vmatprep.subr.mxu1 %v779_v15 }
 0x118   : > { %723 = vmatpush1.msra.mxu0 %v673_v10  ;;  %1400 = vmatpush3.msra.mxu1 %v779_v15 }
 0x119   : > { %724 = vmatprep.subr.mxu0 %v672_v11  ;;  %1413 = vmatprep.mubr.f32.mxu1 %v1830_v16 }
 0x11a   : > { %725 = vmatpush1.msra.mxu0 %v671_v13  ;;  %1401 = vmatprep.subr.mxu1 %v778_v17 }
 0x11b   : > { %1345 = vmatmul.mubr.msk.f32.vlgmr.msra.gmra.mxu0 %vm687_vm0, %v669_v14  ;;  %905 = vxpose.xlu0.b32.start [1/2] (short) (narrow) %v669_v14, 32 }
 0x11c   : > { %764 = vmatprep.mubr.f32.mxu0 %v1487_v53  ;;  %1402 = vmatpush3.msra.mxu1 %v778_v17 }
 0x11d   : > { %1403 = vmatprep.subr.mxu1 %v777_v18 }
 0x11e   : > { %1404 = vmatpush3.msra.mxu1 %v777_v18 }
 0x11f   : > { %1346 = vmatmul.mubr.msk.f32.gmra.mxu0 %vm687_vm0, %v670_v7  ;;  %1405 = vmatprep.subr.mxu1 %v776_v19 }
 0x120   : > { %1014 = vmatprep.mubr.f32.mxu0 %v1487_v53  ;;  %906 = vxpose.xlu0.b32.end [2/2] (short) (narrow) %v670_v7, 32 }
 0x121   : > { %1406 = vmatpush3.msra.mxu1 %v776_v19 }
 0x122   : > { %1407 = vmatprep.subr.mxu1 %v775_v20 }
 0x123   : > { %1408 = vmatpush3.msra.mxu1 %v775_v20 }
 0x124   : > { %1409 = vmatprep.subr.mxu1 %v774_v21 }
 0x125   : > { %1410 = vmatpush3.msra.mxu1 %v774_v21 }
 0x126   : > { %1411 = vmatprep.subr.mxu1 %v773_v22 }
 0x127   : > { %1412 = vmatpush3.msra.mxu1 %v773_v22 }
 0x128   : > { %1414 = vmatmul.mubr.f32.vlgmr.msra.gmra.mxu1 %v1857_v23 }
 0x198   : > { %v921_v42 = vpop.trf.xlu0 }
 0x19c   : > { %v922_v48 = vpop.trf.xlu0 }
 0x1a0   : > { %v923_v49 = vpop.trf.xlu0 }
 0x1a4   : > { %v924_v50 = vpop.trf.xlu0 }
 0x1db   : > { %v760_v24 = vpop.f32.mrf.mxu0 }
 0x1dd   : > { %v762_v25 = vpop.f32.mrf.mxu0 }
 0x1df   : > { %v766_v26 = vpop.f32.mrf.mxu0 }
 0x1e1   : > { %v768_v44 = vpop.f32.mrf.mxu0 }
 0x1e8   : > { %v1415_v27 = vpop.f32.mrf.mxu1 }
 0x1e9   : > { %v865_v29 = vadd.f32 %v1415_v27, %v766_v26 }
 0x1ea   : > { %v855_v30 = vpop.f32.mrf.mxu1 }
 0x1eb   : > { %v1863_v31 = vadd.f32 %v1347_v28, %v865_v29  ;;  %v864_v32 = vadd.f32 %v855_v30, %v760_v24 }
 0x1ed   : > { %v1349_v33 = vmul.f32 -1.442695, %v1863_v31  ;;  %v1866_v34 = vadd.f32 %v1347_v28, %v864_v32  ;;  %1059 = vadd.xlane.f32.xlu1 %v1863_v31  ;;  %v1064_v37 = vmul.f32 %v1863_v31, %v1863_v31 }
 0x1ef   : > { %1426 = vpow2.f32 %v1349_v33  ;;  %v1348_v35 = vmul.f32 -1.442695, %v1866_v34  ;;  %v1063_v36 = vmul.f32 %v1866_v34, %v1866_v34 }
 0x1f1   : > { %1428 = vpow2.f32 %v1348_v35  ;;  %1065 = vadd.xlane.f32.xlu0 %v1063_v36  ;;  %1057 = vadd.xlane.f32.xlu1 %v1866_v34  ;;  %v894_v36 = vld [vmem:[#allocation4] sm:$0xff] }
 0x1f5   : > { %1067 = vadd.xlane.f32.xlu1 %v1064_v37 }
 0x1fc   : > { %v1427_v38 = vpop.eup %1426 }
 0x1fd   : > { %v882_v39 = vadd.f32 1.0, %v1427_v38 }
 0x1fe   : > { %v1429_v40 = vpop.eup %1428 }
 0x1ff   : > { %1430 = vrcp.f32 %v882_v39  ;;  %v881_v41 = vadd.f32 1.0, %v1429_v40  ;;  %v895_v39 = vld [vmem:[#allocation4 + $0x18] sm:$0xff] }
 0x201   : > { %1432 = vrcp.f32 %v881_v41 }
 0x20c   : > { %v1431_v43 = vpop.eup %1430 }
 0x20d   : > { %978 = vmatprep.subr.mxu0 %v1431_v43  ;;  %v888_v45 = vmul.f32 %v1431_v43, %v768_v44 }
 0x20e   : > { %v1433_v46 = vpop.eup %1432 }
 0x20f   : > { %979 = vmatpush1.msra.mxu0 %v888_v45  ;;  %v887_v47 = vmul.f32 %v1433_v46, %v762_v25  ;;  %v897_v45 = vld [vmem:[#allocation4 + $0x38] sm:$0xff] }
 0x210   : > { %980 = vmatprep.subr.mxu0 %v1433_v46 }
 0x211   : > { %981 = vmatpush1.msra.mxu0 %v887_v47  ;;  %v898_v47 = vld [vmem:[#allocation4 + $0x28] sm:$0xff] }
 0x212   : > { %1350 = vmatmul.mubr.msk.f32.vlgmr.msra.gmra.mxu0 %vm937_vm1, %v921_v42  ;;  %v896_v42 = vld [vmem:[#allocation4 + $0x20] sm:$0xff] }
 0x213   : > { %1020 = vmatprep.mubr.f32.mxu0 %v1487_v53 }
 0x216   : > { %1351 = vmatmul.mubr.msk.f32.gmra.mxu0 %vm937_vm1, %v922_v48 }
 0x217   : > { %1026 = vmatprep.mubr.f32.mxu0 %v1487_v53 }
 0x21a   : > { %1352 = vmatmul.mubr.msk.f32.gmra.mxu0 %vm937_vm1, %v923_v49  ;;  %v899_v49 = vld [vmem:[#allocation4 + $0x30] sm:$0xff] }
 0x21b   : > { %1032 = vmatprep.mubr.f32.mxu0 %v1487_v53  ;;  %v1878_v53 = vshrl.u32 %v1085_v4, 7 }
 0x21d   : > { %v1087_v6 = vsub.s32 2, %v1878_v53  ;;  %v1093_v8 = vsub.s32 3, %v1878_v53 }
 0x21e   : > { %1353 = vmatmul.mubr.msk.f32.gmra.mxu0 %vm937_vm1, %v924_v50 }
 0x21f   : > { %v1088_v9 = vrot.slane %v1552_v0, %v1087_v6  ;;  %v1094_v13 = vrot.slane %v1552_v0, %v1093_v8 }
 0x276   : > { %v1060_v51 = vpop.xlane.xlu1 %1059 }
 0x277   : > { %v1062_v55 = vmul.f32 0.03125, %v1060_v51 }
 0x279   : > { %v1072_v60 = vmul.f32 %v1062_v55, %v1062_v55  ;;  %v1078_v12 = vsub.f32 %v1863_v31, %v1062_v55 }
 0x27a   : > { %v1066_v52 = vpop.xlane.xlu0 %1065  ;;  %v1058_v54 = vpop.xlane.xlu1 %1057 }
 0x27b   : > { %v1061_v56 = vmul.f32 0.03125, %v1058_v54  ;;  %v1069_v57 = vmul.f32 0.03125, %v1066_v52  ;;  %v900_v52 = vld [vmem:[#allocation4 + $0x10] sm:$0xff] }
 0x27d   : > { %v1071_v58 = vmul.f32 %v1061_v56, %v1061_v56  ;;  %v1077_v10 = vsub.f32 %v1866_v34, %v1061_v56  ;;  %v893_v34 = vld [vmem:[#allocation4 + $0x8] sm:$0xff] }
 0x27e   : > { %v1068_v59 = vpop.xlane.xlu1 %1067 }
 0x27f   : > { %v1073_v61 = vsub.f32 %v1069_v57, %v1071_v58  ;;  %v1070_v62 = vmul.f32 0.03125, %v1068_v59 }
 0x281   : > { %v1075_v63 = vmax.f32 %v1073_v61, 0.0  ;;  %v1074_v1 = vsub.f32 %v1070_v62, %v1072_v60 }
 0x283   : > { %v1079_v2 = vadd.f32 1e-05, %v1075_v63  ;;  %v1076_v3 = vmax.f32 %v1074_v1, 0.0 }
 0x285   : > { %1434 = vrsqrt.f32 %v1079_v2  ;;  %v1080_v5 = vadd.f32 1e-05, %v1076_v3 }
 0x287   : > { %1436 = vrsqrt.f32 %v1080_v5 }
 0x292   : > { %v1435_v11 = vpop.eup %1434 }
 0x293   : > { %v1083_v14 = vmul.f32 %v1435_v11, %v1077_v10 }
 0x294   : > { %v1437_v15 = vpop.eup %1436 }
 0x295   : > { %v1089_v17 = vmul.f32 %v1088_v9, %v1083_v14  ;;  %v1084_v7 = vmul.f32 %v1437_v15, %v1078_v12 }
 0x297   : > { %v1095_v18 = vadd.f32 %v1094_v13, %v1089_v17  ;;  %v1090_v19 = vmul.f32 %v1088_v9, %v1084_v7 }
 0x299   : > { %v1354_v20 = vmul.f32 -1.442695, %v1095_v18  ;;  %v1096_v21 = vadd.f32 %v1094_v13, %v1090_v19 }
 0x29b   : > { %1438 = vpow2.f32 %v1354_v20  ;;  %v1355_v22 = vmul.f32 -1.442695, %v1096_v21 }
 0x29d   : > { %1440 = vpow2.f32 %v1355_v22 }
 0x2a8   : > { %v1439_v24 = vpop.eup %1438 }
 0x2a9   : > { %v1103_v25 = vadd.f32 1.0, %v1439_v24 }
 0x2aa   : > { %v1441_v26 = vpop.eup %1440 }
 0x2ab   : > { %1442 = vrcp.f32 %v1103_v25  ;;  %v1104_v27 = vadd.f32 1.0, %v1441_v26 }
 0x2ad   : > { %1444 = vrcp.f32 %v1104_v27 }
 0x2b8   : > { %v1443_v28 = vpop.eup %1442 }
 0x2b9   : > { %v1109_v29 = vmul.f32 %v1443_v28, %v1095_v18 }
 0x2ba   : > { %v1445_v30 = vpop.eup %1444 }
 0x2bb   : > { %v1111_v31 = vadd.f32 %v1109_v29, %v1830_v16  ;;  %v1110_v32 = vmul.f32 %v1445_v30, %v1096_v21 }
 0x2bd   : > { %1113 = vst [vmem:[%s1567_s23] sm:$0xff] %v1111_v31  ;;  %v1112_v33 = vadd.f32 %v1110_v32, %v1857_v23 }
 0x2bf   : > { %1114 = vst [vmem:[%s1567_s23 + $0x8] sm:$0xff] %v1112_v33 }
 0x2d2   : > { %v1016_v35 = vpop.f32.mrf.mxu0 }
 0x2d3   : > { %v1039_v37 = vadd.f32 %v1016_v35, %v893_v34 }
 0x2d4   : > { %v1018_v38 = vpop.f32.mrf.mxu0 }
 0x2d5   : > { %1047 = vst [vmem:[#allocation4 + $0x8] sm:$0xff] %v1039_v37  ;;  %v1040_v40 = vadd.f32 %v1018_v38, %v894_v36 }
 0x2d6   : > { %v1022_v41 = vpop.f32.mrf.mxu0 }
 0x2d7   : > { %1048 = vst [vmem:[#allocation4] sm:$0xff] %v1040_v40  ;;  %v1041_v43 = vadd.f32 %v1022_v41, %v895_v39 }
 0x2d8   : > { %v1024_v44 = vpop.f32.mrf.mxu0 }
 0x2d9   : > { %1049 = vst [vmem:[#allocation4 + $0x18] sm:$0xff] %v1041_v43  ;;  %v1042_v16 = vadd.f32 %v1024_v44, %v896_v42 }
 0x2da   : > { %v1028_v46 = vpop.f32.mrf.mxu0 }
 0x2db   : > { %1050 = vst [vmem:[#allocation4 + $0x20] sm:$0xff] %v1042_v16  ;;  %v1043_v23 = vadd.f32 %v1028_v46, %v897_v45 }
 0x2dc   : > { %v1030_v48 = vpop.f32.mrf.mxu0 }
 0x2dd   : > { %1051 = vst [vmem:[#allocation4 + $0x38] sm:$0xff] %v1043_v23  ;;  %v1044_v50 = vadd.f32 %v1030_v48, %v898_v47 }
 0x2de   : > { %v1034_v51 = vpop.f32.mrf.mxu0 }
 0x2df   : > { %1052 = vst [vmem:[#allocation4 + $0x28] sm:$0xff] %v1044_v50  ;;  %v1045_v54 = vadd.f32 %v1034_v51, %v899_v49  ;;  %1118 = sbr.rel (%p1356_p5) target bundleno = 979 (0x3d3), region = 60 }
 0x2e0   : > { %v1036_v55 = vpop.f32.mrf.mxu0 }
 0x2e1   : > { %1053 = vst [vmem:[#allocation4 + $0x30] sm:$0xff] %v1045_v54  ;;  %v1046_v56 = vadd.f32 %v1036_v55, %v900_v52 }
 0x2e3   : > { %1054 = vst [vmem:[#allocation4 + $0x10] sm:$0xff] %v1046_v56 }
 0x2e4   : > { %v1123_v59 = vld [vmem:[#allocation4] sm:$0xff]  ;;  %v1121_v2 = vld [vmem:[#allocation4 + $0x38] sm:$0xff]  ;;  %v1119_v3 = vld [vmem:[#allocation4 + $0x8] sm:$0xff] }
 0x2e5   : > { %v1127_v60 = vadd.f32 1e-06, %v1123_v59  ;;  %v1124_v63 = vld [vmem:[#allocation4 + $0x20] sm:$0xff]  ;;  %v1141_v5 = vld [vmem:[#allocation2 + $0x38] sm:$0xff]  ;;  %v1142_v14 = vld [vmem:[#allocation2 + $0x28] sm:$0xff]  ;;  %v1209_v59 = vsub.s32 0, %v1878_v53 }
 0x2e6   : > { %v1125_v57 = vld [vmem:[#allocation4 + $0x28] sm:$0xff]  ;;  %v1128_v1 = vadd.f32 1e-06, %v1124_v63  ;;  %v1139_v10 = vld [vmem:[#allocation2 + $0x18] sm:$0xff] }
 0x2e7   : > { %v1129_v58 = vadd.f32 1e-06, %v1125_v57  ;;  %v1120_v11 = vld [vmem:[#allocation4 + $0x18] sm:$0xff]  ;;  %v1140_v18 = vld [vmem:[#allocation2 + $0x48] sm:$0xff] }
 0x2e8   : > { %v1122_v6 = vld [vmem:[#allocation4 + $0x30] sm:$0xff] }
 0x2e9   : > { %1446 = vrcp.f32 %v1129_v58 }
 0x2ea   : > { %v1126_v61 = vld [vmem:[#allocation4 + $0x10] sm:$0xff]  ;;  %1448 = vrcp.f32 %v1127_v60  ;;  %v1217_v60 = vsub.s32 1, %v1878_v53 }
 0x2eb   : > { %v1130_v62 = vadd.f32 1e-06, %v1126_v61 }
 0x2ed   : > { %1450 = vrcp.f32 %v1130_v62  ;;  %v1210_v62 = vrot.slane %v1552_v0, %v1209_v59 }
 0x2ee   : > { %1452 = vrcp.f32 %v1128_v1 }
 0x2f6   : > { %v1447_v4 = vpop.eup %1446 }
 0x2f7   : > { %v1449_v8 = vpop.eup %1448  ;;  %v1136_v9 = vmul.f32 %v1447_v4, %v1121_v2 }
 0x2f8   : > { %v1132_v13 = vmul.f32 %v1449_v8, %v1119_v3  ;;  %v1218_v3 = vrot.slane %v1552_v0, %v1217_v60 }
 0x2f9   : > { %v1891_v17 = vadd.f32 %v1141_v5, %v1136_v9 }
 0x2fa   : > { %v1451_v12 = vpop.eup %1450  ;;  %v1143_v19 = vadd.f32 %v1139_v10, %v1132_v13 }
 0x2fb   : > { %v1453_v15 = vpop.eup %1452  ;;  %v1138_v7 = vmul.f32 %v1451_v12, %v1122_v6  ;;  %1155 = vadd.xlane.f32.xlu1 %v1891_v17  ;;  %v1165_v27 = vmul.f32 %v1891_v17, %v1891_v17 }
 0x2fc   : > { %v1134_v20 = vmul.f32 %v1453_v15, %v1120_v11  ;;  %1151 = vadd.xlane.f32.xlu0 %v1143_v19  ;;  %v1163_v25 = vmul.f32 %v1143_v19, %v1143_v19 }
 0x2fd   : > { %v1894_v21 = vadd.f32 %v1142_v14, %v1138_v7 }
 0x2fe   : > { %v1144_v22 = vadd.f32 %v1140_v18, %v1134_v20 }
 0x2ff   : > { %1157 = vadd.xlane.f32.xlu1 %v1894_v21  ;;  %v1166_v26 = vmul.f32 %v1894_v21, %v1894_v21 }
 0x300   : > { %v1164_v24 = vmul.f32 %v1144_v22, %v1144_v22  ;;  %1153 = vadd.xlane.f32.xlu0 %v1144_v22 }
 0x303   : > { %1169 = vadd.xlane.f32.xlu1 %v1164_v24 }
 0x304   : > { %1167 = vadd.xlane.f32.xlu0 %v1163_v25 }
 0x307   : > { %1173 = vadd.xlane.f32.xlu1 %v1166_v26 }
 0x308   : > { %1171 = vadd.xlane.f32.xlu0 %v1165_v27 }
 0x384   : > { %v1156_v28 = vpop.xlane.xlu1 %1155 }
 0x385   : > { %v1152_v29 = vpop.xlane.xlu0 %1151  ;;  %v1161_v39 = vmul.f32 0.03125, %v1156_v28 }
 0x386   : > { %v1159_v32 = vmul.f32 0.03125, %v1152_v29 }
 0x387   : > { %v1181_v23 = vmul.f32 %v1161_v39, %v1161_v39  ;;  %v1193_v10 = vsub.f32 %v1891_v17, %v1161_v39 }
 0x388   : > { %v1158_v30 = vpop.xlane.xlu1 %1157  ;;  %v1179_v40 = vmul.f32 %v1159_v32, %v1159_v32  ;;  %v1191_v1 = vsub.f32 %v1143_v19, %v1159_v32 }
 0x389   : > { %v1154_v31 = vpop.xlane.xlu0 %1153  ;;  %v1162_v35 = vmul.f32 0.03125, %v1158_v30 }
 0x38a   : > { %v1160_v33 = vmul.f32 0.03125, %v1154_v31 }
 0x38b   : > { %v1182_v45 = vmul.f32 %v1162_v35, %v1162_v35  ;;  %v1194_v6 = vsub.f32 %v1894_v21, %v1162_v35 }
 0x38c   : > { %v1170_v34 = vpop.xlane.xlu1 %1169  ;;  %v1180_v36 = vmul.f32 %v1160_v33, %v1160_v33  ;;  %v1192_v61 = vsub.f32 %v1144_v22, %v1160_v33  ;;  %v1148_v33 = vld [vmem:[%s1934_s0 + $0x8] sm:$0xff] }
 0x38d   : > { %v1176_v37 = vmul.f32 0.03125, %v1170_v34  ;;  %v1168_v38 = vpop.xlane.xlu0 %1167 }
 0x38e   : > { %v1175_v41 = vmul.f32 0.03125, %v1168_v38 }
 0x38f   : > { %v1184_v42 = vsub.f32 %v1176_v37, %v1180_v36  ;;  %v1147_v36 = vld [vmem:[%s1934_s0] sm:$0xff] }
 0x390   : > { %v1183_v43 = vsub.f32 %v1175_v41, %v1179_v40  ;;  %v1174_v44 = vpop.xlane.xlu1 %1173  ;;  %v1150_v41 = vld [vmem:[%s1934_s0 + $0x18] sm:$0xff] }
 0x391   : > { %v1188_v16 = vmax.f32 %v1184_v42, 0.0  ;;  %v1178_v46 = vmul.f32 0.03125, %v1174_v44  ;;  %v1172_v47 = vpop.xlane.xlu0 %1171  ;;  %v1149_v44 = vld [vmem:[%s1934_s0 + $0x10] sm:$0xff] }
 0x392   : > { %v1187_v48 = vmax.f32 %v1183_v43, 0.0  ;;  %v1177_v49 = vmul.f32 0.03125, %v1172_v47 }
 0x393   : > { %v1196_v50 = vadd.f32 1e-05, %v1188_v16  ;;  %v1186_v51 = vsub.f32 %v1178_v46, %v1182_v45 }
 0x394   : > { %v1195_v52 = vadd.f32 1e-05, %v1187_v48  ;;  %v1185_v54 = vsub.f32 %v1177_v49, %v1181_v23 }
 0x395   : > { %1454 = vrsqrt.f32 %v1196_v50  ;;  %v1190_v55 = vmax.f32 %v1186_v51, 0.0 }
 0x396   : > { %1456 = vrsqrt.f32 %v1195_v52  ;;  %v1189_v56 = vmax.f32 %v1185_v54, 0.0 }
 0x397   : > { %v1198_v57 = vadd.f32 1e-05, %v1190_v55 }
 0x398   : > { %v1197_v58 = vadd.f32 1e-05, %v1189_v56 }
 0x399   : > { %1458 = vrsqrt.f32 %v1198_v57 }
 0x39a   : > { %1460 = vrsqrt.f32 %v1197_v58 }
 0x3a2   : > { %v1455_v63 = vpop.eup %1454 }
 0x3a3   : > { %v1457_v2 = vpop.eup %1456  ;;  %v1204_v4 = vmul.f32 %v1455_v63, %v1192_v61 }
 0x3a4   : > { %v1203_v5 = vmul.f32 %v1457_v2, %v1191_v1 }
 0x3a5   : > { %v1212_v8 = vmul.f32 %v1210_v62, %v1204_v4 }
 0x3a6   : > { %v1459_v9 = vpop.eup %1458  ;;  %v1211_v11 = vmul.f32 %v1210_v62, %v1203_v5 }
 0x3a7   : > { %v1461_v12 = vpop.eup %1460  ;;  %v1220_v13 = vadd.f32 %v1218_v3, %v1212_v8  ;;  %v1206_v53 = vmul.f32 %v1459_v9, %v1194_v6 }
 0x3a8   : > { %v1219_v14 = vadd.f32 %v1218_v3, %v1211_v11  ;;  %v1205_v15 = vmul.f32 %v1461_v12, %v1193_v10 }
 0x3a9   : > { %v1358_v7 = vmul.f32 -1.442695, %v1220_v13  ;;  %v1214_v18 = vmul.f32 %v1210_v62, %v1206_v53 }
 0x3aa   : > { %v1357_v19 = vmul.f32 -1.442695, %v1219_v14  ;;  %v1213_v20 = vmul.f32 %v1210_v62, %v1205_v15 }
 0x3ab   : > { %1462 = vpow2.f32 %v1358_v7  ;;  %v1222_v0 = vadd.f32 %v1218_v3, %v1214_v18 }
 0x3ac   : > { %1464 = vpow2.f32 %v1357_v19  ;;  %v1221_v22 = vadd.f32 %v1218_v3, %v1213_v20 }
 0x3ad   : > { %v1360_v24 = vmul.f32 -1.442695, %v1222_v0 }
 0x3ae   : > { %v1359_v21 = vmul.f32 -1.442695, %v1221_v22 }
 0x3af   : > { %1466 = vpow2.f32 %v1360_v24 }
 0x3b0   : > { %1468 = vpow2.f32 %v1359_v21 }
 0x3b8   : > { %v1463_v25 = vpop.eup %1462 }
 0x3b9   : > { %v1465_v17 = vpop.eup %1464  ;;  %v1236_v26 = vadd.f32 1.0, %v1463_v25 }
 0x3ba   : > { %v1235_v27 = vadd.f32 1.0, %v1465_v17 }
 0x3bb   : > { %1470 = vrcp.f32 %v1236_v26 }
 0x3bc   : > { %v1467_v28 = vpop.eup %1466  ;;  %1472 = vrcp.f32 %v1235_v27 }
 0x3bd   : > { %v1469_v29 = vpop.eup %1468  ;;  %v1238_v30 = vadd.f32 1.0, %v1467_v28 }
 0x3be   : > { %v1237_v31 = vadd.f32 1.0, %v1469_v29 }
 0x3bf   : > { %1474 = vrcp.f32 %v1238_v30 }
 0x3c0   : > { %1476 = vrcp.f32 %v1237_v31 }
 0x3c8   : > { %v1471_v32 = vpop.eup %1470 }
 0x3c9   : > { %v1473_v34 = vpop.eup %1472  ;;  %v1248_v35 = vmul.f32 %v1471_v32, %v1220_v13 }
 0x3ca   : > { %v1247_v37 = vmul.f32 %v1473_v34, %v1219_v14 }
 0x3cb   : > { %v1252_v38 = vadd.f32 %v1248_v35, %v1148_v33 }
 0x3cc   : > { %v1475_v39 = vpop.eup %1474  ;;  %v1251_v40 = vadd.f32 %v1247_v37, %v1147_v36 }
 0x3cd   : > { %v1477_v42 = vpop.eup %1476  ;;  %1256 = vst [vmem:[%s1942_s8 + $0x8] sm:$0xff] %v1252_v38  ;;  %v1250_v43 = vmul.f32 %v1475_v39, %v1222_v0 }
 0x3ce   : > { %1255 = vst [vmem:[%s1942_s8] sm:$0xff] %v1251_v40  ;;  %v1249_v45 = vmul.f32 %v1477_v42, %v1221_v22 }
 0x3cf   : > { %v1254_v16 = vadd.f32 %v1250_v43, %v1150_v41 }
 0x3d0   : > { %v1253_v46 = vadd.f32 %v1249_v45, %v1149_v44 }
 0x3d1   : > { %1258 = vst [vmem:[%s1942_s8 + $0x18] sm:$0xff] %v1254_v16 }
 0x3d2   : > { %1257 = vst [vmem:[%s1942_s8 + $0x10] sm:$0xff] %v1253_v46 }
 0x3d3 PF: > { %s20_s30 = sadd.s32 1, %s1484_s30  }
 0x3d4   : > { %p17_p6 = scmp.ge.s32.totalorder %s20_s30, 5  }
 0x3d6   :  { %19 = sbr.rel (!%p17_p6) target bundleno = 1 (0x1), region = 101 }

</bundles_post_ra>
